<compile_context>
chip_gen: v5e
topology: v5e:2x2
jax: 0.10.0
libtpu: 0.0.40
codegen_flags: <defaults>
</compile_context>

<pallas_src>
import functools

import numpy as np
import jax
import jax.numpy as jnp
from jax.experimental import pallas as pl
from jax.experimental.pallas import tpu as pltpu

# ----------------------------- tokenizer ids ---------------------------------
PAD_ID, CLS_ID, EOS_ID, SEP_ID = 0, 1, 2, 3

# ----------------------------- problem sizes ---------------------------------
B = 2            # batch
BEAM = 4         # num_samples (beam size)
V = 128          # vocab size
H = 128          # hidden size
KW = 4           # keywords per sample
MAX_LEN = 8      # max_target_len
MIN_LEN = 4      # min_length


# =============================================================================
# Fused whole-decode-loop kernel.
#   grid step s (= decode step):
#     emb_rows = onehot(last_tok) @ embedding                    (MXU gather)
#     logits   = tanh(emb_rows + feat) @ W + b                   (MXU f32)
#     logp     = log_softmax(logits)
#     scores   = logp + prev ; min-length mask ; trigram row block
#     topk per batch group on the natural (R,V) tile
#     outputs[s] = (vals, token_ids, surviving_rows)
#     state: permute feat / history rows by surviving rows, append new tokens
# =============================================================================
def _beam_decode_kernel(emb_ref, w_ref, b_ref, feat0_ref, prev_ref,
                        vals_ref, toks_ref, rows_ref,
                        feat_s, hist_s, ltok_s,
                        *, beam, vocab, eos_id, cls_id, min_len, block_trigram):
    f32 = jnp.float32
    s = pl.program_id(0)
    R, _ = feat_s.shape
    Vv = vocab
    HL = hist_s.shape[1]
    NEG_BIG = f32(-1e20)
    NEG_INF = f32(-jnp.inf)
    BIGF = f32(1e9)

    lane_v = jax.lax.broadcasted_iota(jnp.int32, (R, Vv), 1)           # (R,V)
    lane_vf = lane_v.astype(f32)
    row_col = jax.lax.broadcasted_iota(jnp.int32, (R, 1), 0).astype(f32)
    hist_lane = jax.lax.broadcasted_iota(jnp.int32, (R, HL), 1)        # (R,HL)

    # ---- step-0 state init (feature rows, growing beam, last token) ----------
    @pl.when(s == 0)
    def _():
        feat_s[...] = feat0_ref[...]
        hist_s[...] = jnp.where(hist_lane == 0, f32(cls_id), f32(0.0))
        ltok_s[...] = jnp.full((R, 1), cls_id, f32)

    feat = feat_s[...]
    hist = hist_s[...]

    # ---- synthetic decoder step (stand-in for model.run_token) ---------------
    onehot = (lane_vf == ltok_s[...]).astype(f32)                      # (R,V)
    emb_rows = jnp.dot(onehot, emb_ref[...], preferred_element_type=f32)
    act = jnp.tanh(emb_rows + feat)
    logits = jnp.dot(act, w_ref[...], preferred_element_type=f32) + b_ref[...]

    # ---- log_softmax ----------------------------------------------------------
    m = jnp.max(logits, axis=-1, keepdims=True)
    z = logits - m
    lse = jnp.log(jnp.sum(jnp.exp(z), axis=-1, keepdims=True))
    logp = z - lse

    # ---- beam scores + constraints -------------------------------------------
    # prev is the *stale* initial topk_log_probabilities, exactly as in the
    # reference (step() never writes the local topk values back to self.*).
    scores = logp + prev_ref[...]
    scores = jnp.where((lane_v == eos_id) & (s + 1 < min_len), NEG_BIG, scores)

    if block_trigram:
        # last trigram of every row vs all earlier trigrams, fully vectorised.
        def col(c):
            return jnp.max(jnp.where(hist_lane == c, hist, f32(-1.0)),
                           axis=1, keepdims=True)
        a_l, b_l, c_l = col(s), col(s - 1), col(s - 2)
        h1 = pltpu.roll(hist, 1, 1)          # hist[p-1] at lane p
        h2 = pltpu.roll(hist, 2, 1)          # hist[p-2] at lane p
        match = ((hist == a_l) & (h1 == b_l) & (h2 == c_l)
                 & (hist_lane >= 2) & (hist_lane <= s - 1))
        blocked = jnp.max(jnp.where(match, f32(1.0), f32(0.0)),
                          axis=1, keepdims=True)                       # (R,1)
        scores = jnp.where(blocked > 0, NEG_BIG, scores)

    # ---- per-batch-group top-k on the natural (R,V) tile ---------------------
    gb_rows = jnp.floor(row_col / beam)            # (R,1) group id of each row
    beam_pos = row_col - gb_rows * beam            # (R,1) beam index within group
    fidx = beam_pos * Vv + lane_vf                 # within-group flat index
    grp0 = row_col < beam                          # (R,1) (two groups here)

    x = scores
    vals_col = jnp.zeros((R, 1), f32)
    toks_col = jnp.zeros((R, 1), f32)
    srow_col = jnp.zeros((R, 1), f32)
    for j in range(beam):                          # fully unrolled, k = beam
        rmax = jnp.max(x, axis=1, keepdims=True)                           # (R,1)
        g0 = jnp.max(jnp.where(grp0, rmax, NEG_INF), axis=0, keepdims=True)
        g1 = jnp.max(jnp.where(grp0, NEG_INF, rmax), axis=0, keepdims=True)
        gmax = jnp.where(grp0, g0, g1)             # per-row broadcast of group max
        cand = jnp.where(x >= gmax, fidx, BIGF)
        rmin = jnp.min(cand, axis=1, keepdims=True)
        i0 = jnp.min(jnp.where(grp0, rmin, BIGF), axis=0, keepdims=True)
        i1 = jnp.min(jnp.where(grp0, BIGF, rmin), axis=0, keepdims=True)
        gidx = jnp.where(grp0, i0, i1)             # picked flat index per group
        bsel = jnp.floor(gidx / Vv)                # beam id within group
        tsel = gidx - bsel * Vv                    # token id
        rsel = bsel + gb_rows * beam               # surviving (source) row
        tgt = beam_pos == j                        # write slot j of each group
        vals_col = jnp.where(tgt, gmax, vals_col)
        toks_col = jnp.where(tgt, tsel, toks_col)
        srow_col = jnp.where(tgt, rsel, srow_col)
        x = jnp.where(fidx == gidx, NEG_INF, x)    # drop picked entry per group

    # ---- lane-dense per-step outputs ------------------------------------------
    out_l = vals_ref.shape[-1]
    vals_ref[0] = jnp.broadcast_to(vals_col, (R, out_l))
    toks_ref[0] = jnp.broadcast_to(toks_col, (R, out_l)).astype(jnp.int32)
    rows_ref[0] = jnp.broadcast_to(srow_col, (R, out_l)).astype(jnp.int32)

    # ---- carry state: permute rows by surviving rows, append new token --------
    new_feat = jnp.zeros_like(feat)
    new_hist = jnp.zeros_like(hist)
    for c in range(R):                             # masked row selects (R = 8)
        sel = srow_col == c
        new_feat = jnp.where(sel, feat[c:c + 1, :], new_feat)
        new_hist = jnp.where(sel, hist[c:c + 1, :], new_hist)
    new_hist = jnp.where(hist_lane == s + 1, toks_col, new_hist)
    feat_s[...] = new_feat
    hist_s[...] = new_hist
    ltok_s[...] = toks_col


def fused_beam_decode(emb, w, b, feat0, prev, *, beam, max_len, min_len,
                      block_trigram):
    R, Hd = feat0.shape
    Vd = w.shape[1]
    assert max_len + 1 <= 128, "token-history scratch holds up to 128 positions"
    OUT_L = 128                                    # lane-dense output width
    kernel = functools.partial(
        _beam_decode_kernel, beam=beam, vocab=Vd, eos_id=EOS_ID, cls_id=CLS_ID,
        min_len=min_len, block_trigram=block_trigram)
    const = lambda s: (0, 0)                       # resident across the grid
    perstep = lambda s: (s, 0, 0)
    return pl.pallas_call(
        kernel,
        grid=(max_len,),
        in_specs=[
            pl.BlockSpec((Vd, Hd), const),         # embedding
            pl.BlockSpec((Hd, Vd), const),         # w_out
            pl.BlockSpec((1, Vd), const),          # b_out
            pl.BlockSpec((R, Hd), const),          # initial feature rows
            pl.BlockSpec((R, 1), const),           # stale prev top-k log probs
        ],
        out_specs=(
            pl.BlockSpec((1, R, OUT_L), perstep),
            pl.BlockSpec((1, R, OUT_L), perstep),
            pl.BlockSpec((1, R, OUT_L), perstep),
        ),
        out_shape=(
            jax.ShapeDtypeStruct((max_len, R, OUT_L), jnp.float32),   # vals
            jax.ShapeDtypeStruct((max_len, R, OUT_L), jnp.int32),     # token ids
            jax.ShapeDtypeStruct((max_len, R, OUT_L), jnp.int32),     # surviving rows
        ),
        scratch_shapes=[
            pltpu.VMEM((R, Hd), jnp.float32),      # feature rows carry
            pltpu.VMEM((R, 128), jnp.float32),     # growing-beam token history
            pltpu.VMEM((R, 1), jnp.float32),       # last token per row
        ],
        compiler_params=pltpu.CompilerParams(
            dimension_semantics=("arbitrary",)),
    )(emb, w, b, feat0, prev)


@functools.partial(jax.jit,
                   static_argnames=("beam", "max_len", "min_len", "block_trigram"))
def beam_decode_all(emb, w, b, vis, keywords, prev, *, beam, max_len, min_len,
                    block_trigram):
    # Beam-major tile, exactly mirroring the reference tile() (unsqueeze(0)
    # .repeat(beam).view(-1, ...)); the reference step() then groups
    # consecutive rows per batch -- that layout quirk of the reference is
    # preserved deliberately.
    Hd = vis.shape[-1]
    vis_t = jnp.tile(vis[None], (beam, 1, 1)).reshape(-1, Hd)
    kw_t = jnp.tile(keywords[None], (beam, 1, 1)).reshape(-1, keywords.shape[-1])
    kw_emb = jnp.mean(jnp.take(emb, kw_t, axis=0), axis=1)
    feat0 = (vis_t + kw_emb).astype(jnp.float32)          # loop-invariant context
    return fused_beam_decode(emb, w, b, feat0, prev, beam=beam, max_len=max_len,
                             min_len=min_len, block_trigram=block_trigram)


# =============================================================================
# Host-side beam-search bookkeeping (mirrors the reference nn.Module).
# =============================================================================
def chunks(lst, n):
    for i in range(0, len(lst), n):
        yield lst[i:i + n]


class TransformerBeamSearchPallas:
    def __init__(self, params, num_samples, max_target_len, min_length=4,
                 alpha=0, block_repeating_trigram=True):
        self.params = params
        self.start_token_id = CLS_ID
        self.end_token_id = EOS_ID
        self.pad_token_id = PAD_ID
        self.sep_token_id = SEP_ID
        self.beam_size = num_samples
        self.min_length = min_length
        self.max_length = max_target_len
        self.block_repeating_trigram = block_repeating_trigram
        self.apply_length_penalty = alpha != 0
        self.alpha = alpha
        self._last_kernel_out = None
        self.results = None

    def length_penalty(self, step):
        return ((5.0 + (step + 1)) / 6.0) ** self.alpha

    # synthetic replacement for self.model.prepare_group
    def prepare_group(self, batch):
        features = {'vis': batch['vis']}
        features_merged = {'vis': batch['vis']}
        keywords = batch['keywords']
        return features, features_merged, keywords, None

    def remove_after_sep(self, x):
        idx = np.nonzero(x == self.sep_token_id)[0]
        if idx.size > 0:
            return x[:int(idx[0]) + 1]
        return x

    def forward(self, batch):
        features, features_merged, keywords, _ = self.prepare_group(batch)
        sample_feature = features_merged[list(features.keys())[0]]
        Bb = int(sample_feature.shape[0])
        beam = self.beam_size
        R = Bb * beam
        p = self.params

        # initial (never-updated, per reference) per-row top-k log-probs
        prev = jnp.asarray(
            np.tile(np.array([0.0] + [-np.inf] * (beam - 1), np.float32), Bb)
        ).reshape(R, 1)

        # ---------------- single fused kernel launch for the whole decode -----
        vals_all, toks_all, rows_all = beam_decode_all(
            p['embedding'], p['w_out'], p['b_out'],
            features_merged['vis'], keywords, prev,
            beam=beam, max_len=self.max_length, min_len=self.min_length,
            block_trigram=self.block_repeating_trigram)
        self._last_kernel_out = (vals_all, toks_all, rows_all)
        jax.block_until_ready(self._last_kernel_out)

        # single D2H of the whole decode trace
        vals_np = np.asarray(vals_all)[:, :, 0].reshape(self.max_length, Bb, beam)
        toks_np = np.asarray(toks_all)[:, :, 0].astype(np.int64).reshape(
            self.max_length, Bb, beam)
        rows_np = np.asarray(rows_all)[:, :, 0].astype(np.int64)   # (max_len, R)

        # ---------------- host bookkeeping (mirrors reference step()) ---------
        # Finished batches keep decoding harmlessly inside the kernel; the host
        # simply ignores their later outputs, which matches the reference
        # semantics for the batches that are still active.
        hypotheses = [[] for _ in range(Bb)]
        results = {'predictions': [[] for _ in range(Bb)],
                   'scores': [[] for _ in range(Bb)]}
        growing = np.full((R, 1), self.start_token_id, dtype=np.int64)
        active = list(range(Bb))

        for s in range(self.max_length):
            step_num = s + 1                       # reference self._step after +=1
            vals = vals_np[s]
            toks = toks_np[s]
            rows = rows_np[s]
            scores = vals / self.length_penalty(s)
            growing = np.concatenate([growing[rows], toks.reshape(-1, 1)], axis=1)
            is_finished = (toks == self.end_token_id)
            if step_num + 1 == self.max_length:    # enforce_max_length
                is_finished[:] = True
            predictions = growing.reshape(Bb, beam, -1)
            still_active = []
            for b in active:
                fin = is_finished[b].copy()
                top_done = bool(fin[0])
                if top_done:
                    fin[:] = True
                for j in np.nonzero(fin)[0]:
                    hypotheses[b].append(
                        (float(scores[b, j]), predictions[b, j, :].copy()))
                if top_done:
                    best_score, best_pred = sorted(
                        hypotheses[b], key=lambda t: t[0], reverse=True)[0]
                    results['scores'][b].append(best_score)
                    results['predictions'][b].append(best_pred)
                else:
                    still_active.append(b)
            active = still_active
            if not active:                         # is_done
                break

        self.results = results
        hypo = results['predictions']
        hypo = [self.remove_after_sep(h[0][1:]) for h in hypo]
        hypo = list(chunks(hypo, 5))
        return hypo


# =============================================================================
if __name__ == "__main__":
    key = jax.random.PRNGKey(0)
    k1, k2, k3, k4, k5 = jax.random.split(key, 5)
    params = {
        'embedding': jax.random.normal(k1, (V, H), jnp.float32) * 0.5,
        'w_out':     jax.random.normal(k2, (H, V), jnp.float32) / np.sqrt(H),
        'b_out':     jax.random.normal(k3, (1, V), jnp.float32) * 0.1,
    }
    batch = {
        'vis':      jax.random.normal(k4, (B, H), jnp.float32),
        'keywords': jax.random.randint(k5, (B, KW), 4, V, dtype=jnp.int32),
    }

    bs = TransformerBeamSearchPallas(params, num_samples=BEAM,
                                     max_target_len=MAX_LEN,
                                     min_length=MIN_LEN, alpha=0,
                                     block_repeating_trigram=True)
    hypo = bs.forward(batch)

    # block on the fused Pallas kernel outputs
    jax.block_until_ready(bs._last_kernel_out)

    total_preds = sum(len(c) for c in hypo)
    assert total_preds == B, f"expected {B} predictions, got {total_preds}"
    print("KERNEL_OK")
</pallas_src>

<mosaic_0001>
module attributes {stable_mosaic.version = 11 : i64} {
  func.func @_beam_decode_kernel(%arg0: i32, %arg1: memref<128x128xf32, #tpu.memory_space<vmem>>, %arg2: memref<128x128xf32, #tpu.memory_space<vmem>>, %arg3: memref<1x128xf32, #tpu.memory_space<vmem>>, %arg4: memref<8x128xf32, #tpu.memory_space<vmem>>, %arg5: memref<8x1xf32, #tpu.memory_space<vmem>>, %arg6: memref<1x8x128xf32, #tpu.memory_space<vmem>>, %arg7: memref<1x8x128xi32, #tpu.memory_space<vmem>>, %arg8: memref<1x8x128xi32, #tpu.memory_space<vmem>>, %arg9: memref<8x128xf32, #tpu.memory_space<vmem>>, %arg10: memref<8x128xf32, #tpu.memory_space<vmem>>, %arg11: memref<8x1xf32, #tpu.memory_space<vmem>>) attributes {dimension_semantics = [#tpu.dimension_semantics<arbitrary>], iteration_bounds = array<i64: 8>, scalar_prefetch = 0 : i64, scratch_operands = 3 : i64, tpu.core_type = #tpu.core_type<tc>, window_params = [{pipeline_mode = #tpu.pipeline_mode<synchronous>, transform_indices = @transform_0, window_bounds = array<i64: 128, 128>}, {pipeline_mode = #tpu.pipeline_mode<synchronous>, transform_indices = @transform_1, window_bounds = array<i64: 128, 128>}, {pipeline_mode = #tpu.pipeline_mode<synchronous>, transform_indices = @transform_2, window_bounds = array<i64: 1, 128>}, {pipeline_mode = #tpu.pipeline_mode<synchronous>, transform_indices = @transform_3, window_bounds = array<i64: 8, 128>}, {pipeline_mode = #tpu.pipeline_mode<synchronous>, transform_indices = @transform_4, window_bounds = array<i64: 8, 1>}, {transform_indices = @transform_5, window_bounds = array<i64: 1, 8, 128>}, {transform_indices = @transform_6, window_bounds = array<i64: 1, 8, 128>}, {transform_indices = @transform_7, window_bounds = array<i64: 1, 8, 128>}]} {
    %0 = tpu.iota {dimensions = array<i32: 1>} : vector<8x128xi32>
    %1 = arith.sitofp %0 : vector<8x128xi32> to vector<8x128xf32>
    %2 = tpu.iota {dimensions = array<i32: 0>} : vector<8x1xi32>
    %3 = arith.sitofp %2 : vector<8x1xi32> to vector<8x1xf32>
    %4 = tpu.iota {dimensions = array<i32: 1>} : vector<8x128xi32>
    %c0_i32 = arith.constant 0 : i32
    %5 = arith.cmpi eq, %arg0, %c0_i32 : i32
    %6 = arith.extui %5 : i1 to i32
    %c0_i32_0 = arith.constant 0 : i32
    %7 = arith.cmpi ne, %6, %c0_i32_0 : i32
    scf.if %7 {
      %c0_131 = arith.constant 0 : index
      %c0_132 = arith.constant 0 : index
      %452 = vector.load %arg4[%c0_131, %c0_132] : memref<8x128xf32, #tpu.memory_space<vmem>>, vector<8x128xf32>
      %c0_133 = arith.constant 0 : index
      %c0_134 = arith.constant 0 : index
      %453 = vector.load %arg9[%c0_133, %c0_134] : memref<8x128xf32, #tpu.memory_space<vmem>>, vector<8x128xf32>
      tpu.vector_store %arg9[%c0_133, %c0_134], %452 {strides = array<i32>} : memref<8x128xf32, #tpu.memory_space<vmem>>, vector<8x128xf32>,
      %c0_i32_135 = arith.constant 0 : i32
      %454 = vector.broadcast %c0_i32_135 : i32 to vector<8x128xi32>
      %455 = arith.cmpi eq, %4, %454 : vector<8x128xi32>
      %cst_136 = arith.constant 1.000000e+00 : f32
      %cst_137 = arith.constant 0.000000e+00 : f32
      %456 = vector.broadcast %cst_136 : f32 to vector<8x128xf32>
      %457 = vector.broadcast %cst_137 : f32 to vector<8x128xf32>
      %458 = arith.select %455, %456, %457 : vector<8x128xi1>, vector<8x128xf32>
      %c0_138 = arith.constant 0 : index
      %c0_139 = arith.constant 0 : index
      %459 = vector.load %arg10[%c0_138, %c0_139] : memref<8x128xf32, #tpu.memory_space<vmem>>, vector<8x128xf32>
      tpu.vector_store %arg10[%c0_138, %c0_139], %458 {strides = array<i32>} : memref<8x128xf32, #tpu.memory_space<vmem>>, vector<8x128xf32>,
      %cst_140 = arith.constant 1.000000e+00 : f32
      %460 = vector.broadcast %cst_140 : f32 to vector<8x1xf32>
      %c0_141 = arith.constant 0 : index
      %c0_142 = arith.constant 0 : index
      %461 = vector.load %arg11[%c0_141, %c0_142] : memref<8x1xf32, #tpu.memory_space<vmem>>, vector<8x1xf32>
      tpu.vector_store %arg11[%c0_141, %c0_142], %460 {strides = array<i32>} : memref<8x1xf32, #tpu.memory_space<vmem>>, vector<8x1xf32>,
    } else {
    }
    %c0 = arith.constant 0 : index
    %c0_1 = arith.constant 0 : index
    %8 = vector.load %arg9[%c0, %c0_1] : memref<8x128xf32, #tpu.memory_space<vmem>>, vector<8x128xf32>
    %c0_2 = arith.constant 0 : index
    %c0_3 = arith.constant 0 : index
    %9 = vector.load %arg10[%c0_2, %c0_3] : memref<8x128xf32, #tpu.memory_space<vmem>>, vector<8x128xf32>
    %c0_4 = arith.constant 0 : index
    %c0_5 = arith.constant 0 : index
    %10 = vector.load %arg11[%c0_4, %c0_5] : memref<8x1xf32, #tpu.memory_space<vmem>>, vector<8x1xf32>
    %11 = vector.broadcast %10 : vector<8x1xf32> to vector<8x128xf32>
    %12 = arith.cmpf oeq, %1, %11 : vector<8x128xf32>
    %13 = arith.extui %12 : vector<8x128xi1> to vector<8x128xi32>
    %14 = arith.sitofp %13 : vector<8x128xi32> to vector<8x128xf32>
    %c0_6 = arith.constant 0 : index
    %c0_7 = arith.constant 0 : index
    %15 = vector.load %arg1[%c0_6, %c0_7] : memref<128x128xf32, #tpu.memory_space<vmem>>, vector<128x128xf32>
    %cst = arith.constant dense<0.000000e+00> : vector<8x128xf32>
    %16 = tpu.matmul %14, %15, %cst {dimension_numbers = #tpu.dot_dimension_numbers<[1], [0], [0], [1], [0, 0, 1, 1], [], []>} : vector<8x128xf32>, vector<128x128xf32>, vector<8x128xf32> -> vector<8x128xf32>
    %17 = arith.addf %16, %8 : vector<8x128xf32>
    %18 = math.tanh %17 : vector<8x128xf32>
    %c0_8 = arith.constant 0 : index
    %c0_9 = arith.constant 0 : index
    %19 = vector.load %arg2[%c0_8, %c0_9] : memref<128x128xf32, #tpu.memory_space<vmem>>, vector<128x128xf32>
    %cst_10 = arith.constant dense<0.000000e+00> : vector<8x128xf32>
    %20 = tpu.matmul %18, %19, %cst_10 {dimension_numbers = #tpu.dot_dimension_numbers<[1], [0], [0], [1], [0, 0, 1, 1], [], []>} : vector<8x128xf32>, vector<128x128xf32>, vector<8x128xf32> -> vector<8x128xf32>
    %c0_11 = arith.constant 0 : index
    %c0_12 = arith.constant 0 : index
    %21 = vector.load %arg3[%c0_11, %c0_12] : memref<1x128xf32, #tpu.memory_space<vmem>>, vector<1x128xf32>
    %22 = vector.broadcast %21 : vector<1x128xf32> to vector<8x128xf32>
    %23 = arith.addf %20, %22 : vector<8x128xf32>
    %cst_13 = arith.constant dense<0xFF800000> : vector<8xf32>
    %24 = vector.multi_reduction <maximumf>, %23, %cst_13 [1] : vector<8x128xf32> to vector<8xf32>
    %25 = vector.shape_cast %24 : vector<8xf32> to vector<8x1xf32>
    %26 = vector.broadcast %25 : vector<8x1xf32> to vector<8x128xf32>
    %27 = arith.subf %23, %26 : vector<8x128xf32>
    %28 = math.exp %27 : vector<8x128xf32>
    %cst_14 = arith.constant dense<0.000000e+00> : vector<8xf32>
    %29 = vector.multi_reduction <add>, %28, %cst_14 [1] : vector<8x128xf32> to vector<8xf32>
    %30 = vector.shape_cast %29 : vector<8xf32> to vector<8x1xf32>
    %31 = math.log %30 : vector<8x1xf32>
    %32 = vector.broadcast %31 : vector<8x1xf32> to vector<8x128xf32>
    %33 = arith.subf %27, %32 : vector<8x128xf32>
    %c0_15 = arith.constant 0 : index
    %c0_16 = arith.constant 0 : index
    %34 = vector.load %arg5[%c0_15, %c0_16] : memref<8x1xf32, #tpu.memory_space<vmem>>, vector<8x1xf32>
    %35 = vector.broadcast %34 : vector<8x1xf32> to vector<8x128xf32>
    %36 = arith.addf %33, %35 : vector<8x128xf32>
    %c2_i32 = arith.constant 2 : i32
    %37 = vector.broadcast %c2_i32 : i32 to vector<8x128xi32>
    %38 = arith.cmpi eq, %0, %37 : vector<8x128xi32>
    %c1_i32 = arith.constant 1 : i32
    %39 = arith.addi %arg0, %c1_i32 : i32
    %c4_i32 = arith.constant 4 : i32
    %40 = arith.cmpi slt, %39, %c4_i32 : i32
    %41 = vector.broadcast %40 : i1 to vector<8x128xi1>
    %42 = arith.andi %38, %41 : vector<8x128xi1>
    %cst_17 = arith.constant -1.000000e+20 : f32
    %43 = vector.broadcast %cst_17 : f32 to vector<8x128xf32>
    %44 = arith.select %42, %43, %36 : vector<8x128xi1>, vector<8x128xf32>
    %45 = vector.broadcast %arg0 : i32 to vector<8x128xi32>
    %46 = arith.cmpi eq, %4, %45 : vector<8x128xi32>
    %cst_18 = arith.constant -1.000000e+00 : f32
    %47 = vector.broadcast %cst_18 : f32 to vector<8x128xf32>
    %48 = arith.select %46, %9, %47 : vector<8x128xi1>, vector<8x128xf32>
    %cst_19 = arith.constant dense<0xFF800000> : vector<8xf32>
    %49 = vector.multi_reduction <maximumf>, %48, %cst_19 [1] : vector<8x128xf32> to vector<8xf32>
    %50 = vector.shape_cast %49 : vector<8xf32> to vector<8x1xf32>
    %c1_i32_20 = arith.constant 1 : i32
    %51 = arith.subi %arg0, %c1_i32_20 : i32
    %52 = vector.broadcast %51 : i32 to vector<8x128xi32>
    %53 = arith.cmpi eq, %4, %52 : vector<8x128xi32>
    %cst_21 = arith.constant -1.000000e+00 : f32
    %54 = vector.broadcast %cst_21 : f32 to vector<8x128xf32>
    %55 = arith.select %53, %9, %54 : vector<8x128xi1>, vector<8x128xf32>
    %cst_22 = arith.constant dense<0xFF800000> : vector<8xf32>
    %56 = vector.multi_reduction <maximumf>, %55, %cst_22 [1] : vector<8x128xf32> to vector<8xf32>
    %57 = vector.shape_cast %56 : vector<8xf32> to vector<8x1xf32>
    %c2_i32_23 = arith.constant 2 : i32
    %58 = arith.subi %arg0, %c2_i32_23 : i32
    %59 = vector.broadcast %58 : i32 to vector<8x128xi32>
    %60 = arith.cmpi eq, %4, %59 : vector<8x128xi32>
    %cst_24 = arith.constant -1.000000e+00 : f32
    %61 = vector.broadcast %cst_24 : f32 to vector<8x128xf32>
    %62 = arith.select %60, %9, %61 : vector<8x128xi1>, vector<8x128xf32>
    %cst_25 = arith.constant dense<0xFF800000> : vector<8xf32>
    %63 = vector.multi_reduction <maximumf>, %62, %cst_25 [1] : vector<8x128xf32> to vector<8xf32>
    %64 = vector.shape_cast %63 : vector<8xf32> to vector<8x1xf32>
    %c1_i32_26 = arith.constant 1 : i32
    %65 = tpu.dynamic_rotate %9 by %c1_i32_26 dim 1 : vector<8x128xf32>, i32 -> vector<8x128xf32>
    %c2_i32_27 = arith.constant 2 : i32
    %66 = tpu.dynamic_rotate %9 by %c2_i32_27 dim 1 : vector<8x128xf32>, i32 -> vector<8x128xf32>
    %67 = vector.broadcast %50 : vector<8x1xf32> to vector<8x128xf32>
    %68 = arith.cmpf oeq, %9, %67 : vector<8x128xf32>
    %69 = vector.broadcast %57 : vector<8x1xf32> to vector<8x128xf32>
    %70 = arith.cmpf oeq, %65, %69 : vector<8x128xf32>
    %71 = arith.andi %68, %70 : vector<8x128xi1>
    %72 = vector.broadcast %64 : vector<8x1xf32> to vector<8x128xf32>
    %73 = arith.cmpf oeq, %66, %72 : vector<8x128xf32>
    %74 = arith.andi %71, %73 : vector<8x128xi1>
    %c2_i32_28 = arith.constant 2 : i32
    %75 = vector.broadcast %c2_i32_28 : i32 to vector<8x128xi32>
    %76 = arith.cmpi sge, %4, %75 : vector<8x128xi32>
    %77 = arith.andi %74, %76 : vector<8x128xi1>
    %c1_i32_29 = arith.constant 1 : i32
    %78 = arith.subi %arg0, %c1_i32_29 : i32
    %79 = vector.broadcast %78 : i32 to vector<8x128xi32>
    %80 = arith.cmpi sle, %4, %79 : vector<8x128xi32>
    %81 = arith.andi %77, %80 : vector<8x128xi1>
    %cst_30 = arith.constant 1.000000e+00 : f32
    %cst_31 = arith.constant 0.000000e+00 : f32
    %82 = vector.broadcast %cst_30 : f32 to vector<8x128xf32>
    %83 = vector.broadcast %cst_31 : f32 to vector<8x128xf32>
    %84 = arith.select %81, %82, %83 : vector<8x128xi1>, vector<8x128xf32>
    %cst_32 = arith.constant dense<0xFF800000> : vector<8xf32>
    %85 = vector.multi_reduction <maximumf>, %84, %cst_32 [1] : vector<8x128xf32> to vector<8xf32>
    %86 = vector.shape_cast %85 : vector<8xf32> to vector<8x1xf32>
    %cst_33 = arith.constant 0.000000e+00 : f32
    %87 = vector.broadcast %cst_33 : f32 to vector<8x1xf32>
    %88 = arith.cmpf ogt, %86, %87 : vector<8x1xf32>
    %cst_34 = arith.constant -1.000000e+20 : f32
    %89 = vector.shape_cast %88 : vector<8x1xi1> to vector<8x1xi1>
    %90 = vector.broadcast %89 : vector<8x1xi1> to vector<8x128xi1>
    %91 = vector.broadcast %cst_34 : f32 to vector<8x128xf32>
    %92 = arith.select %90, %91, %44 : vector<8x128xi1>, vector<8x128xf32>
    %cst_35 = arith.constant 4.000000e+00 : f32
    %93 = vector.broadcast %cst_35 : f32 to vector<8x1xf32>
    %94 = arith.divf %3, %93 : vector<8x1xf32>
    %95 = math.floor %94 : vector<8x1xf32>
    %cst_36 = arith.constant 4.000000e+00 : f32
    %96 = vector.broadcast %cst_36 : f32 to vector<8x1xf32>
    %97 = arith.mulf %95, %96 : vector<8x1xf32>
    %98 = arith.subf %3, %97 : vector<8x1xf32>
    %cst_37 = arith.constant 1.280000e+02 : f32
    %99 = vector.broadcast %cst_37 : f32 to vector<8x1xf32>
    %100 = arith.mulf %98, %99 : vector<8x1xf32>
    %101 = vector.broadcast %100 : vector<8x1xf32> to vector<8x128xf32>
    %102 = arith.addf %101, %1 : vector<8x128xf32>
    %cst_38 = arith.constant 4.000000e+00 : f32
    %103 = vector.broadcast %cst_38 : f32 to vector<8x1xf32>
    %104 = arith.cmpf olt, %3, %103 : vector<8x1xf32>
    %cst_39 = arith.constant 0.000000e+00 : f32
    %105 = vector.broadcast %cst_39 : f32 to vector<8x1xf32>
    %cst_40 = arith.constant 0.000000e+00 : f32
    %106 = vector.broadcast %cst_40 : f32 to vector<8x1xf32>
    %cst_41 = arith.constant 0.000000e+00 : f32
    %107 = vector.broadcast %cst_41 : f32 to vector<8x1xf32>
    %cst_42 = arith.constant dense<0xFF800000> : vector<8xf32>
    %108 = vector.multi_reduction <maximumf>, %92, %cst_42 [1] : vector<8x128xf32> to vector<8xf32>
    %109 = vector.shape_cast %108 : vector<8xf32> to vector<8x1xf32>
    %cst_43 = arith.constant 0xFF800000 : f32
    %110 = vector.broadcast %cst_43 : f32 to vector<8x1xf32>
    %111 = arith.select %104, %109, %110 : vector<8x1xi1>, vector<8x1xf32>
    %cst_44 = arith.constant dense<0xFF800000> : vector<1xf32>
    %112 = vector.multi_reduction <maximumf>, %111, %cst_44 [0] : vector<8x1xf32> to vector<1xf32>
    %113 = vector.shape_cast %112 : vector<1xf32> to vector<1x1xf32>
    %cst_45 = arith.constant 0xFF800000 : f32
    %114 = vector.broadcast %cst_45 : f32 to vector<8x1xf32>
    %115 = arith.select %104, %114, %109 : vector<8x1xi1>, vector<8x1xf32>
    %cst_46 = arith.constant dense<0xFF800000> : vector<1xf32>
    %116 = vector.multi_reduction <maximumf>, %115, %cst_46 [0] : vector<8x1xf32> to vector<1xf32>
    %117 = vector.shape_cast %116 : vector<1xf32> to vector<1x1xf32>
    %118 = vector.shape_cast %113 : vector<1x1xf32> to vector<1x1xf32>
    %119 = vector.broadcast %118 : vector<1x1xf32> to vector<8x1xf32>
    %120 = vector.shape_cast %117 : vector<1x1xf32> to vector<1x1xf32>
    %121 = vector.broadcast %120 : vector<1x1xf32> to vector<8x1xf32>
    %122 = arith.select %104, %119, %121 : vector<8x1xi1>, vector<8x1xf32>
    %123 = vector.broadcast %122 : vector<8x1xf32> to vector<8x128xf32>
    %124 = arith.cmpf oge, %92, %123 : vector<8x128xf32>
    %cst_47 = arith.constant 1.000000e+09 : f32
    %125 = vector.broadcast %cst_47 : f32 to vector<8x128xf32>
    %126 = arith.select %124, %102, %125 : vector<8x128xi1>, vector<8x128xf32>
    %cst_48 = arith.constant dense<0x7F800000> : vector<8xf32>
    %127 = vector.multi_reduction <minimumf>, %126, %cst_48 [1] : vector<8x128xf32> to vector<8xf32>
    %128 = vector.shape_cast %127 : vector<8xf32> to vector<8x1xf32>
    %cst_49 = arith.constant 1.000000e+09 : f32
    %129 = vector.broadcast %cst_49 : f32 to vector<8x1xf32>
    %130 = arith.select %104, %128, %129 : vector<8x1xi1>, vector<8x1xf32>
    %cst_50 = arith.constant dense<0x7F800000> : vector<1xf32>
    %131 = vector.multi_reduction <minimumf>, %130, %cst_50 [0] : vector<8x1xf32> to vector<1xf32>
    %132 = vector.shape_cast %131 : vector<1xf32> to vector<1x1xf32>
    %cst_51 = arith.constant 1.000000e+09 : f32
    %133 = vector.broadcast %cst_51 : f32 to vector<8x1xf32>
    %134 = arith.select %104, %133, %128 : vector<8x1xi1>, vector<8x1xf32>
    %cst_52 = arith.constant dense<0x7F800000> : vector<1xf32>
    %135 = vector.multi_reduction <minimumf>, %134, %cst_52 [0] : vector<8x1xf32> to vector<1xf32>
    %136 = vector.shape_cast %135 : vector<1xf32> to vector<1x1xf32>
    %137 = vector.shape_cast %132 : vector<1x1xf32> to vector<1x1xf32>
    %138 = vector.broadcast %137 : vector<1x1xf32> to vector<8x1xf32>
    %139 = vector.shape_cast %136 : vector<1x1xf32> to vector<1x1xf32>
    %140 = vector.broadcast %139 : vector<1x1xf32> to vector<8x1xf32>
    %141 = arith.select %104, %138, %140 : vector<8x1xi1>, vector<8x1xf32>
    %cst_53 = arith.constant 1.280000e+02 : f32
    %142 = vector.broadcast %cst_53 : f32 to vector<8x1xf32>
    %143 = arith.divf %141, %142 : vector<8x1xf32>
    %144 = math.floor %143 : vector<8x1xf32>
    %cst_54 = arith.constant 1.280000e+02 : f32
    %145 = vector.broadcast %cst_54 : f32 to vector<8x1xf32>
    %146 = arith.mulf %144, %145 : vector<8x1xf32>
    %147 = arith.subf %141, %146 : vector<8x1xf32>
    %cst_55 = arith.constant 4.000000e+00 : f32
    %148 = vector.broadcast %cst_55 : f32 to vector<8x1xf32>
    %149 = arith.mulf %95, %148 : vector<8x1xf32>
    %150 = arith.addf %144, %149 : vector<8x1xf32>
    %cst_56 = arith.constant 0.000000e+00 : f32
    %151 = vector.broadcast %cst_56 : f32 to vector<8x1xf32>
    %152 = arith.cmpf oeq, %98, %151 : vector<8x1xf32>
    %153 = arith.select %152, %122, %105 : vector<8x1xi1>, vector<8x1xf32>
    %154 = arith.select %152, %147, %106 : vector<8x1xi1>, vector<8x1xf32>
    %155 = arith.select %152, %150, %107 : vector<8x1xi1>, vector<8x1xf32>
    %156 = vector.broadcast %141 : vector<8x1xf32> to vector<8x128xf32>
    %157 = arith.cmpf oeq, %102, %156 : vector<8x128xf32>
    %cst_57 = arith.constant 0xFF800000 : f32
    %158 = vector.broadcast %cst_57 : f32 to vector<8x128xf32>
    %159 = arith.select %157, %158, %92 : vector<8x128xi1>, vector<8x128xf32>
    %cst_58 = arith.constant dense<0xFF800000> : vector<8xf32>
    %160 = vector.multi_reduction <maximumf>, %159, %cst_58 [1] : vector<8x128xf32> to vector<8xf32>
    %161 = vector.shape_cast %160 : vector<8xf32> to vector<8x1xf32>
    %cst_59 = arith.constant 0xFF800000 : f32
    %162 = vector.broadcast %cst_59 : f32 to vector<8x1xf32>
    %163 = arith.select %104, %161, %162 : vector<8x1xi1>, vector<8x1xf32>
    %cst_60 = arith.constant dense<0xFF800000> : vector<1xf32>
    %164 = vector.multi_reduction <maximumf>, %163, %cst_60 [0] : vector<8x1xf32> to vector<1xf32>
    %165 = vector.shape_cast %164 : vector<1xf32> to vector<1x1xf32>
    %cst_61 = arith.constant 0xFF800000 : f32
    %166 = vector.broadcast %cst_61 : f32 to vector<8x1xf32>
    %167 = arith.select %104, %166, %161 : vector<8x1xi1>, vector<8x1xf32>
    %cst_62 = arith.constant dense<0xFF800000> : vector<1xf32>
    %168 = vector.multi_reduction <maximumf>, %167, %cst_62 [0] : vector<8x1xf32> to vector<1xf32>
    %169 = vector.shape_cast %168 : vector<1xf32> to vector<1x1xf32>
    %170 = vector.shape_cast %165 : vector<1x1xf32> to vector<1x1xf32>
    %171 = vector.broadcast %170 : vector<1x1xf32> to vector<8x1xf32>
    %172 = vector.shape_cast %169 : vector<1x1xf32> to vector<1x1xf32>
    %173 = vector.broadcast %172 : vector<1x1xf32> to vector<8x1xf32>
    %174 = arith.select %104, %171, %173 : vector<8x1xi1>, vector<8x1xf32>
    %175 = vector.broadcast %174 : vector<8x1xf32> to vector<8x128xf32>
    %176 = arith.cmpf oge, %159, %175 : vector<8x128xf32>
    %cst_63 = arith.constant 1.000000e+09 : f32
    %177 = vector.broadcast %cst_63 : f32 to vector<8x128xf32>
    %178 = arith.select %176, %102, %177 : vector<8x128xi1>, vector<8x128xf32>
    %cst_64 = arith.constant dense<0x7F800000> : vector<8xf32>
    %179 = vector.multi_reduction <minimumf>, %178, %cst_64 [1] : vector<8x128xf32> to vector<8xf32>
    %180 = vector.shape_cast %179 : vector<8xf32> to vector<8x1xf32>
    %cst_65 = arith.constant 1.000000e+09 : f32
    %181 = vector.broadcast %cst_65 : f32 to vector<8x1xf32>
    %182 = arith.select %104, %180, %181 : vector<8x1xi1>, vector<8x1xf32>
    %cst_66 = arith.constant dense<0x7F800000> : vector<1xf32>
    %183 = vector.multi_reduction <minimumf>, %182, %cst_66 [0] : vector<8x1xf32> to vector<1xf32>
    %184 = vector.shape_cast %183 : vector<1xf32> to vector<1x1xf32>
    %cst_67 = arith.constant 1.000000e+09 : f32
    %185 = vector.broadcast %cst_67 : f32 to vector<8x1xf32>
    %186 = arith.select %104, %185, %180 : vector<8x1xi1>, vector<8x1xf32>
    %cst_68 = arith.constant dense<0x7F800000> : vector<1xf32>
    %187 = vector.multi_reduction <minimumf>, %186, %cst_68 [0] : vector<8x1xf32> to vector<1xf32>
    %188 = vector.shape_cast %187 : vector<1xf32> to vector<1x1xf32>
    %189 = vector.shape_cast %184 : vector<1x1xf32> to vector<1x1xf32>
    %190 = vector.broadcast %189 : vector<1x1xf32> to vector<8x1xf32>
    %191 = vector.shape_cast %188 : vector<1x1xf32> to vector<1x1xf32>
    %192 = vector.broadcast %191 : vector<1x1xf32> to vector<8x1xf32>
    %193 = arith.select %104, %190, %192 : vector<8x1xi1>, vector<8x1xf32>
    %cst_69 = arith.constant 1.280000e+02 : f32
    %194 = vector.broadcast %cst_69 : f32 to vector<8x1xf32>
    %195 = arith.divf %193, %194 : vector<8x1xf32>
    %196 = math.floor %195 : vector<8x1xf32>
    %cst_70 = arith.constant 1.280000e+02 : f32
    %197 = vector.broadcast %cst_70 : f32 to vector<8x1xf32>
    %198 = arith.mulf %196, %197 : vector<8x1xf32>
    %199 = arith.subf %193, %198 : vector<8x1xf32>
    %cst_71 = arith.constant 4.000000e+00 : f32
    %200 = vector.broadcast %cst_71 : f32 to vector<8x1xf32>
    %201 = arith.mulf %95, %200 : vector<8x1xf32>
    %202 = arith.addf %196, %201 : vector<8x1xf32>
    %cst_72 = arith.constant 1.000000e+00 : f32
    %203 = vector.broadcast %cst_72 : f32 to vector<8x1xf32>
    %204 = arith.cmpf oeq, %98, %203 : vector<8x1xf32>
    %205 = arith.select %204, %174, %153 : vector<8x1xi1>, vector<8x1xf32>
    %206 = arith.select %204, %199, %154 : vector<8x1xi1>, vector<8x1xf32>
    %207 = arith.select %204, %202, %155 : vector<8x1xi1>, vector<8x1xf32>
    %208 = vector.broadcast %193 : vector<8x1xf32> to vector<8x128xf32>
    %209 = arith.cmpf oeq, %102, %208 : vector<8x128xf32>
    %cst_73 = arith.constant 0xFF800000 : f32
    %210 = vector.broadcast %cst_73 : f32 to vector<8x128xf32>
    %211 = arith.select %209, %210, %159 : vector<8x128xi1>, vector<8x128xf32>
    %cst_74 = arith.constant dense<0xFF800000> : vector<8xf32>
    %212 = vector.multi_reduction <maximumf>, %211, %cst_74 [1] : vector<8x128xf32> to vector<8xf32>
    %213 = vector.shape_cast %212 : vector<8xf32> to vector<8x1xf32>
    %cst_75 = arith.constant 0xFF800000 : f32
    %214 = vector.broadcast %cst_75 : f32 to vector<8x1xf32>
    %215 = arith.select %104, %213, %214 : vector<8x1xi1>, vector<8x1xf32>
    %cst_76 = arith.constant dense<0xFF800000> : vector<1xf32>
    %216 = vector.multi_reduction <maximumf>, %215, %cst_76 [0] : vector<8x1xf32> to vector<1xf32>
    %217 = vector.shape_cast %216 : vector<1xf32> to vector<1x1xf32>
    %cst_77 = arith.constant 0xFF800000 : f32
    %218 = vector.broadcast %cst_77 : f32 to vector<8x1xf32>
    %219 = arith.select %104, %218, %213 : vector<8x1xi1>, vector<8x1xf32>
    %cst_78 = arith.constant dense<0xFF800000> : vector<1xf32>
    %220 = vector.multi_reduction <maximumf>, %219, %cst_78 [0] : vector<8x1xf32> to vector<1xf32>
    %221 = vector.shape_cast %220 : vector<1xf32> to vector<1x1xf32>
    %222 = vector.shape_cast %217 : vector<1x1xf32> to vector<1x1xf32>
    %223 = vector.broadcast %222 : vector<1x1xf32> to vector<8x1xf32>
    %224 = vector.shape_cast %221 : vector<1x1xf32> to vector<1x1xf32>
    %225 = vector.broadcast %224 : vector<1x1xf32> to vector<8x1xf32>
    %226 = arith.select %104, %223, %225 : vector<8x1xi1>, vector<8x1xf32>
    %227 = vector.broadcast %226 : vector<8x1xf32> to vector<8x128xf32>
    %228 = arith.cmpf oge, %211, %227 : vector<8x128xf32>
    %cst_79 = arith.constant 1.000000e+09 : f32
    %229 = vector.broadcast %cst_79 : f32 to vector<8x128xf32>
    %230 = arith.select %228, %102, %229 : vector<8x128xi1>, vector<8x128xf32>
    %cst_80 = arith.constant dense<0x7F800000> : vector<8xf32>
    %231 = vector.multi_reduction <minimumf>, %230, %cst_80 [1] : vector<8x128xf32> to vector<8xf32>
    %232 = vector.shape_cast %231 : vector<8xf32> to vector<8x1xf32>
    %cst_81 = arith.constant 1.000000e+09 : f32
    %233 = vector.broadcast %cst_81 : f32 to vector<8x1xf32>
    %234 = arith.select %104, %232, %233 : vector<8x1xi1>, vector<8x1xf32>
    %cst_82 = arith.constant dense<0x7F800000> : vector<1xf32>
    %235 = vector.multi_reduction <minimumf>, %234, %cst_82 [0] : vector<8x1xf32> to vector<1xf32>
    %236 = vector.shape_cast %235 : vector<1xf32> to vector<1x1xf32>
    %cst_83 = arith.constant 1.000000e+09 : f32
    %237 = vector.broadcast %cst_83 : f32 to vector<8x1xf32>
    %238 = arith.select %104, %237, %232 : vector<8x1xi1>, vector<8x1xf32>
    %cst_84 = arith.constant dense<0x7F800000> : vector<1xf32>
    %239 = vector.multi_reduction <minimumf>, %238, %cst_84 [0] : vector<8x1xf32> to vector<1xf32>
    %240 = vector.shape_cast %239 : vector<1xf32> to vector<1x1xf32>
    %241 = vector.shape_cast %236 : vector<1x1xf32> to vector<1x1xf32>
    %242 = vector.broadcast %241 : vector<1x1xf32> to vector<8x1xf32>
    %243 = vector.shape_cast %240 : vector<1x1xf32> to vector<1x1xf32>
    %244 = vector.broadcast %243 : vector<1x1xf32> to vector<8x1xf32>
    %245 = arith.select %104, %242, %244 : vector<8x1xi1>, vector<8x1xf32>
    %cst_85 = arith.constant 1.280000e+02 : f32
    %246 = vector.broadcast %cst_85 : f32 to vector<8x1xf32>
    %247 = arith.divf %245, %246 : vector<8x1xf32>
    %248 = math.floor %247 : vector<8x1xf32>
    %cst_86 = arith.constant 1.280000e+02 : f32
    %249 = vector.broadcast %cst_86 : f32 to vector<8x1xf32>
    %250 = arith.mulf %248, %249 : vector<8x1xf32>
    %251 = arith.subf %245, %250 : vector<8x1xf32>
    %cst_87 = arith.constant 4.000000e+00 : f32
    %252 = vector.broadcast %cst_87 : f32 to vector<8x1xf32>
    %253 = arith.mulf %95, %252 : vector<8x1xf32>
    %254 = arith.addf %248, %253 : vector<8x1xf32>
    %cst_88 = arith.constant 2.000000e+00 : f32
    %255 = vector.broadcast %cst_88 : f32 to vector<8x1xf32>
    %256 = arith.cmpf oeq, %98, %255 : vector<8x1xf32>
    %257 = arith.select %256, %226, %205 : vector<8x1xi1>, vector<8x1xf32>
    %258 = arith.select %256, %251, %206 : vector<8x1xi1>, vector<8x1xf32>
    %259 = arith.select %256, %254, %207 : vector<8x1xi1>, vector<8x1xf32>
    %260 = vector.broadcast %245 : vector<8x1xf32> to vector<8x128xf32>
    %261 = arith.cmpf oeq, %102, %260 : vector<8x128xf32>
    %cst_89 = arith.constant 0xFF800000 : f32
    %262 = vector.broadcast %cst_89 : f32 to vector<8x128xf32>
    %263 = arith.select %261, %262, %211 : vector<8x128xi1>, vector<8x128xf32>
    %cst_90 = arith.constant dense<0xFF800000> : vector<8xf32>
    %264 = vector.multi_reduction <maximumf>, %263, %cst_90 [1] : vector<8x128xf32> to vector<8xf32>
    %265 = vector.shape_cast %264 : vector<8xf32> to vector<8x1xf32>
    %cst_91 = arith.constant 0xFF800000 : f32
    %266 = vector.broadcast %cst_91 : f32 to vector<8x1xf32>
    %267 = arith.select %104, %265, %266 : vector<8x1xi1>, vector<8x1xf32>
    %cst_92 = arith.constant dense<0xFF800000> : vector<1xf32>
    %268 = vector.multi_reduction <maximumf>, %267, %cst_92 [0] : vector<8x1xf32> to vector<1xf32>
    %269 = vector.shape_cast %268 : vector<1xf32> to vector<1x1xf32>
    %cst_93 = arith.constant 0xFF800000 : f32
    %270 = vector.broadcast %cst_93 : f32 to vector<8x1xf32>
    %271 = arith.select %104, %270, %265 : vector<8x1xi1>, vector<8x1xf32>
    %cst_94 = arith.constant dense<0xFF800000> : vector<1xf32>
    %272 = vector.multi_reduction <maximumf>, %271, %cst_94 [0] : vector<8x1xf32> to vector<1xf32>
    %273 = vector.shape_cast %272 : vector<1xf32> to vector<1x1xf32>
    %274 = vector.shape_cast %269 : vector<1x1xf32> to vector<1x1xf32>
    %275 = vector.broadcast %274 : vector<1x1xf32> to vector<8x1xf32>
    %276 = vector.shape_cast %273 : vector<1x1xf32> to vector<1x1xf32>
    %277 = vector.broadcast %276 : vector<1x1xf32> to vector<8x1xf32>
    %278 = arith.select %104, %275, %277 : vector<8x1xi1>, vector<8x1xf32>
    %279 = vector.broadcast %278 : vector<8x1xf32> to vector<8x128xf32>
    %280 = arith.cmpf oge, %263, %279 : vector<8x128xf32>
    %cst_95 = arith.constant 1.000000e+09 : f32
    %281 = vector.broadcast %cst_95 : f32 to vector<8x128xf32>
    %282 = arith.select %280, %102, %281 : vector<8x128xi1>, vector<8x128xf32>
    %cst_96 = arith.constant dense<0x7F800000> : vector<8xf32>
    %283 = vector.multi_reduction <minimumf>, %282, %cst_96 [1] : vector<8x128xf32> to vector<8xf32>
    %284 = vector.shape_cast %283 : vector<8xf32> to vector<8x1xf32>
    %cst_97 = arith.constant 1.000000e+09 : f32
    %285 = vector.broadcast %cst_97 : f32 to vector<8x1xf32>
    %286 = arith.select %104, %284, %285 : vector<8x1xi1>, vector<8x1xf32>
    %cst_98 = arith.constant dense<0x7F800000> : vector<1xf32>
    %287 = vector.multi_reduction <minimumf>, %286, %cst_98 [0] : vector<8x1xf32> to vector<1xf32>
    %288 = vector.shape_cast %287 : vector<1xf32> to vector<1x1xf32>
    %cst_99 = arith.constant 1.000000e+09 : f32
    %289 = vector.broadcast %cst_99 : f32 to vector<8x1xf32>
    %290 = arith.select %104, %289, %284 : vector<8x1xi1>, vector<8x1xf32>
    %cst_100 = arith.constant dense<0x7F800000> : vector<1xf32>
    %291 = vector.multi_reduction <minimumf>, %290, %cst_100 [0] : vector<8x1xf32> to vector<1xf32>
    %292 = vector.shape_cast %291 : vector<1xf32> to vector<1x1xf32>
    %293 = vector.shape_cast %288 : vector<1x1xf32> to vector<1x1xf32>
    %294 = vector.broadcast %293 : vector<1x1xf32> to vector<8x1xf32>
    %295 = vector.shape_cast %292 : vector<1x1xf32> to vector<1x1xf32>
    %296 = vector.broadcast %295 : vector<1x1xf32> to vector<8x1xf32>
    %297 = arith.select %104, %294, %296 : vector<8x1xi1>, vector<8x1xf32>
    %cst_101 = arith.constant 1.280000e+02 : f32
    %298 = vector.broadcast %cst_101 : f32 to vector<8x1xf32>
    %299 = arith.divf %297, %298 : vector<8x1xf32>
    %300 = math.floor %299 : vector<8x1xf32>
    %cst_102 = arith.constant 1.280000e+02 : f32
    %301 = vector.broadcast %cst_102 : f32 to vector<8x1xf32>
    %302 = arith.mulf %300, %301 : vector<8x1xf32>
    %303 = arith.subf %297, %302 : vector<8x1xf32>
    %cst_103 = arith.constant 4.000000e+00 : f32
    %304 = vector.broadcast %cst_103 : f32 to vector<8x1xf32>
    %305 = arith.mulf %95, %304 : vector<8x1xf32>
    %306 = arith.addf %300, %305 : vector<8x1xf32>
    %cst_104 = arith.constant 3.000000e+00 : f32
    %307 = vector.broadcast %cst_104 : f32 to vector<8x1xf32>
    %308 = arith.cmpf oeq, %98, %307 : vector<8x1xf32>
    %309 = arith.select %308, %278, %257 : vector<8x1xi1>, vector<8x1xf32>
    %310 = arith.select %308, %303, %258 : vector<8x1xi1>, vector<8x1xf32>
    %311 = arith.select %308, %306, %259 : vector<8x1xi1>, vector<8x1xf32>
    %312 = vector.shape_cast %309 : vector<8x1xf32> to vector<8x1xf32>
    %313 = vector.broadcast %312 : vector<8x1xf32> to vector<8x128xf32>
    %c0_105 = arith.constant 0 : index
    %c0_106 = arith.constant 0 : index
    %c0_107 = arith.constant 0 : index
    %314 = vector.load %arg6[%c0_105, %c0_106, %c0_107] : memref<1x8x128xf32, #tpu.memory_space<vmem>>, vector<1x8x128xf32>
    %315 = vector.shape_cast %314 : vector<1x8x128xf32> to vector<8x128xf32>
    %316 = vector.shape_cast %313 : vector<8x128xf32> to vector<1x8x128xf32>
    tpu.vector_store %arg6[%c0_105, %c0_106, %c0_107], %316 {strides = array<i32>} : memref<1x8x128xf32, #tpu.memory_space<vmem>>, vector<1x8x128xf32>,
    %317 = vector.shape_cast %310 : vector<8x1xf32> to vector<8x1xf32>
    %318 = vector.broadcast %317 : vector<8x1xf32> to vector<8x128xf32>
    %319 = arith.fptosi %318 : vector<8x128xf32> to vector<8x128xi32>
    %c0_108 = arith.constant 0 : index
    %c0_109 = arith.constant 0 : index
    %c0_110 = arith.constant 0 : index
    %320 = vector.load %arg7[%c0_108, %c0_109, %c0_110] : memref<1x8x128xi32, #tpu.memory_space<vmem>>, vector<1x8x128xi32>
    %321 = vector.shape_cast %320 : vector<1x8x128xi32> to vector<8x128xi32>
    %322 = vector.shape_cast %319 : vector<8x128xi32> to vector<1x8x128xi32>
    tpu.vector_store %arg7[%c0_108, %c0_109, %c0_110], %322 {strides = array<i32>} : memref<1x8x128xi32, #tpu.memory_space<vmem>>, vector<1x8x128xi32>,
    %323 = vector.shape_cast %311 : vector<8x1xf32> to vector<8x1xf32>
    %324 = vector.broadcast %323 : vector<8x1xf32> to vector<8x128xf32>
    %325 = arith.fptosi %324 : vector<8x128xf32> to vector<8x128xi32>
    %c0_111 = arith.constant 0 : index
    %c0_112 = arith.constant 0 : index
    %c0_113 = arith.constant 0 : index
    %326 = vector.load %arg8[%c0_111, %c0_112, %c0_113] : memref<1x8x128xi32, #tpu.memory_space<vmem>>, vector<1x8x128xi32>
    %327 = vector.shape_cast %326 : vector<1x8x128xi32> to vector<8x128xi32>
    %328 = vector.shape_cast %325 : vector<8x128xi32> to vector<1x8x128xi32>
    tpu.vector_store %arg8[%c0_111, %c0_112, %c0_113], %328 {strides = array<i32>} : memref<1x8x128xi32, #tpu.memory_space<vmem>>, vector<1x8x128xi32>,
    %cst_114 = arith.constant 0.000000e+00 : f32
    %329 = vector.broadcast %cst_114 : f32 to vector<8x128xf32>
    %cst_115 = arith.constant 0.000000e+00 : f32
    %330 = vector.broadcast %cst_115 : f32 to vector<8x128xf32>
    %cst_116 = arith.constant 0.000000e+00 : f32
    %331 = vector.broadcast %cst_116 : f32 to vector<8x1xf32>
    %332 = arith.cmpf oeq, %311, %331 : vector<8x1xf32>
    %333 = vector.extract_strided_slice %8 {offsets = [0, 0], sizes = [1, 128], strides = [1, 1]} : vector<8x128xf32> to vector<1x128xf32>
    %334 = vector.shape_cast %332 : vector<8x1xi1> to vector<8x1xi1>
    %335 = vector.broadcast %334 : vector<8x1xi1> to vector<8x128xi1>
    %336 = vector.shape_cast %333 : vector<1x128xf32> to vector<1x128xf32>
    %337 = vector.broadcast %336 : vector<1x128xf32> to vector<8x128xf32>
    %338 = arith.select %335, %337, %329 : vector<8x128xi1>, vector<8x128xf32>
    %339 = vector.extract_strided_slice %9 {offsets = [0, 0], sizes = [1, 128], strides = [1, 1]} : vector<8x128xf32> to vector<1x128xf32>
    %340 = vector.shape_cast %332 : vector<8x1xi1> to vector<8x1xi1>
    %341 = vector.broadcast %340 : vector<8x1xi1> to vector<8x128xi1>
    %342 = vector.shape_cast %339 : vector<1x128xf32> to vector<1x128xf32>
    %343 = vector.broadcast %342 : vector<1x128xf32> to vector<8x128xf32>
    %344 = arith.select %341, %343, %330 : vector<8x128xi1>, vector<8x128xf32>
    %cst_117 = arith.constant 1.000000e+00 : f32
    %345 = vector.broadcast %cst_117 : f32 to vector<8x1xf32>
    %346 = arith.cmpf oeq, %311, %345 : vector<8x1xf32>
    %347 = vector.extract_strided_slice %8 {offsets = [1, 0], sizes = [1, 128], strides = [1, 1]} : vector<8x128xf32> to vector<1x128xf32>
    %348 = vector.shape_cast %346 : vector<8x1xi1> to vector<8x1xi1>
    %349 = vector.broadcast %348 : vector<8x1xi1> to vector<8x128xi1>
    %350 = vector.shape_cast %347 : vector<1x128xf32> to vector<1x128xf32>
    %351 = vector.broadcast %350 : vector<1x128xf32> to vector<8x128xf32>
    %352 = arith.select %349, %351, %338 : vector<8x128xi1>, vector<8x128xf32>
    %353 = vector.extract_strided_slice %9 {offsets = [1, 0], sizes = [1, 128], strides = [1, 1]} : vector<8x128xf32> to vector<1x128xf32>
    %354 = vector.shape_cast %346 : vector<8x1xi1> to vector<8x1xi1>
    %355 = vector.broadcast %354 : vector<8x1xi1> to vector<8x128xi1>
    %356 = vector.shape_cast %353 : vector<1x128xf32> to vector<1x128xf32>
    %357 = vector.broadcast %356 : vector<1x128xf32> to vector<8x128xf32>
    %358 = arith.select %355, %357, %344 : vector<8x128xi1>, vector<8x128xf32>
    %cst_118 = arith.constant 2.000000e+00 : f32
    %359 = vector.broadcast %cst_118 : f32 to vector<8x1xf32>
    %360 = arith.cmpf oeq, %311, %359 : vector<8x1xf32>
    %361 = vector.extract_strided_slice %8 {offsets = [2, 0], sizes = [1, 128], strides = [1, 1]} : vector<8x128xf32> to vector<1x128xf32>
    %362 = vector.shape_cast %360 : vector<8x1xi1> to vector<8x1xi1>
    %363 = vector.broadcast %362 : vector<8x1xi1> to vector<8x128xi1>
    %364 = vector.shape_cast %361 : vector<1x128xf32> to vector<1x128xf32>
    %365 = vector.broadcast %364 : vector<1x128xf32> to vector<8x128xf32>
    %366 = arith.select %363, %365, %352 : vector<8x128xi1>, vector<8x128xf32>
    %367 = vector.extract_strided_slice %9 {offsets = [2, 0], sizes = [1, 128], strides = [1, 1]} : vector<8x128xf32> to vector<1x128xf32>
    %368 = vector.shape_cast %360 : vector<8x1xi1> to vector<8x1xi1>
    %369 = vector.broadcast %368 : vector<8x1xi1> to vector<8x128xi1>
    %370 = vector.shape_cast %367 : vector<1x128xf32> to vector<1x128xf32>
    %371 = vector.broadcast %370 : vector<1x128xf32> to vector<8x128xf32>
    %372 = arith.select %369, %371, %358 : vector<8x128xi1>, vector<8x128xf32>
    %cst_119 = arith.constant 3.000000e+00 : f32
    %373 = vector.broadcast %cst_119 : f32 to vector<8x1xf32>
    %374 = arith.cmpf oeq, %311, %373 : vector<8x1xf32>
    %375 = vector.extract_strided_slice %8 {offsets = [3, 0], sizes = [1, 128], strides = [1, 1]} : vector<8x128xf32> to vector<1x128xf32>
    %376 = vector.shape_cast %374 : vector<8x1xi1> to vector<8x1xi1>
    %377 = vector.broadcast %376 : vector<8x1xi1> to vector<8x128xi1>
    %378 = vector.shape_cast %375 : vector<1x128xf32> to vector<1x128xf32>
    %379 = vector.broadcast %378 : vector<1x128xf32> to vector<8x128xf32>
    %380 = arith.select %377, %379, %366 : vector<8x128xi1>, vector<8x128xf32>
    %381 = vector.extract_strided_slice %9 {offsets = [3, 0], sizes = [1, 128], strides = [1, 1]} : vector<8x128xf32> to vector<1x128xf32>
    %382 = vector.shape_cast %374 : vector<8x1xi1> to vector<8x1xi1>
    %383 = vector.broadcast %382 : vector<8x1xi1> to vector<8x128xi1>
    %384 = vector.shape_cast %381 : vector<1x128xf32> to vector<1x128xf32>
    %385 = vector.broadcast %384 : vector<1x128xf32> to vector<8x128xf32>
    %386 = arith.select %383, %385, %372 : vector<8x128xi1>, vector<8x128xf32>
    %cst_120 = arith.constant 4.000000e+00 : f32
    %387 = vector.broadcast %cst_120 : f32 to vector<8x1xf32>
    %388 = arith.cmpf oeq, %311, %387 : vector<8x1xf32>
    %389 = vector.extract_strided_slice %8 {offsets = [4, 0], sizes = [1, 128], strides = [1, 1]} : vector<8x128xf32> to vector<1x128xf32>
    %390 = vector.shape_cast %388 : vector<8x1xi1> to vector<8x1xi1>
    %391 = vector.broadcast %390 : vector<8x1xi1> to vector<8x128xi1>
    %392 = vector.shape_cast %389 : vector<1x128xf32> to vector<1x128xf32>
    %393 = vector.broadcast %392 : vector<1x128xf32> to vector<8x128xf32>
    %394 = arith.select %391, %393, %380 : vector<8x128xi1>, vector<8x128xf32>
    %395 = vector.extract_strided_slice %9 {offsets = [4, 0], sizes = [1, 128], strides = [1, 1]} : vector<8x128xf32> to vector<1x128xf32>
    %396 = vector.shape_cast %388 : vector<8x1xi1> to vector<8x1xi1>
    %397 = vector.broadcast %396 : vector<8x1xi1> to vector<8x128xi1>
    %398 = vector.shape_cast %395 : vector<1x128xf32> to vector<1x128xf32>
    %399 = vector.broadcast %398 : vector<1x128xf32> to vector<8x128xf32>
    %400 = arith.select %397, %399, %386 : vector<8x128xi1>, vector<8x128xf32>
    %cst_121 = arith.constant 5.000000e+00 : f32
    %401 = vector.broadcast %cst_121 : f32 to vector<8x1xf32>
    %402 = arith.cmpf oeq, %311, %401 : vector<8x1xf32>
    %403 = vector.extract_strided_slice %8 {offsets = [5, 0], sizes = [1, 128], strides = [1, 1]} : vector<8x128xf32> to vector<1x128xf32>
    %404 = vector.shape_cast %402 : vector<8x1xi1> to vector<8x1xi1>
    %405 = vector.broadcast %404 : vector<8x1xi1> to vector<8x128xi1>
    %406 = vector.shape_cast %403 : vector<1x128xf32> to vector<1x128xf32>
    %407 = vector.broadcast %406 : vector<1x128xf32> to vector<8x128xf32>
    %408 = arith.select %405, %407, %394 : vector<8x128xi1>, vector<8x128xf32>
    %409 = vector.extract_strided_slice %9 {offsets = [5, 0], sizes = [1, 128], strides = [1, 1]} : vector<8x128xf32> to vector<1x128xf32>
    %410 = vector.shape_cast %402 : vector<8x1xi1> to vector<8x1xi1>
    %411 = vector.broadcast %410 : vector<8x1xi1> to vector<8x128xi1>
    %412 = vector.shape_cast %409 : vector<1x128xf32> to vector<1x128xf32>
    %413 = vector.broadcast %412 : vector<1x128xf32> to vector<8x128xf32>
    %414 = arith.select %411, %413, %400 : vector<8x128xi1>, vector<8x128xf32>
    %cst_122 = arith.constant 6.000000e+00 : f32
    %415 = vector.broadcast %cst_122 : f32 to vector<8x1xf32>
    %416 = arith.cmpf oeq, %311, %415 : vector<8x1xf32>
    %417 = vector.extract_strided_slice %8 {offsets = [6, 0], sizes = [1, 128], strides = [1, 1]} : vector<8x128xf32> to vector<1x128xf32>
    %418 = vector.shape_cast %416 : vector<8x1xi1> to vector<8x1xi1>
    %419 = vector.broadcast %418 : vector<8x1xi1> to vector<8x128xi1>
    %420 = vector.shape_cast %417 : vector<1x128xf32> to vector<1x128xf32>
    %421 = vector.broadcast %420 : vector<1x128xf32> to vector<8x128xf32>
    %422 = arith.select %419, %421, %408 : vector<8x128xi1>, vector<8x128xf32>
    %423 = vector.extract_strided_slice %9 {offsets = [6, 0], sizes = [1, 128], strides = [1, 1]} : vector<8x128xf32> to vector<1x128xf32>
    %424 = vector.shape_cast %416 : vector<8x1xi1> to vector<8x1xi1>
    %425 = vector.broadcast %424 : vector<8x1xi1> to vector<8x128xi1>
    %426 = vector.shape_cast %423 : vector<1x128xf32> to vector<1x128xf32>
    %427 = vector.broadcast %426 : vector<1x128xf32> to vector<8x128xf32>
    %428 = arith.select %425, %427, %414 : vector<8x128xi1>, vector<8x128xf32>
    %cst_123 = arith.constant 7.000000e+00 : f32
    %429 = vector.broadcast %cst_123 : f32 to vector<8x1xf32>
    %430 = arith.cmpf oeq, %311, %429 : vector<8x1xf32>
    %431 = vector.extract_strided_slice %8 {offsets = [7, 0], sizes = [1, 128], strides = [1, 1]} : vector<8x128xf32> to vector<1x128xf32>
    %432 = vector.shape_cast %430 : vector<8x1xi1> to vector<8x1xi1>
    %433 = vector.broadcast %432 : vector<8x1xi1> to vector<8x128xi1>
    %434 = vector.shape_cast %431 : vector<1x128xf32> to vector<1x128xf32>
    %435 = vector.broadcast %434 : vector<1x128xf32> to vector<8x128xf32>
    %436 = arith.select %433, %435, %422 : vector<8x128xi1>, vector<8x128xf32>
    %437 = vector.extract_strided_slice %9 {offsets = [7, 0], sizes = [1, 128], strides = [1, 1]} : vector<8x128xf32> to vector<1x128xf32>
    %438 = vector.shape_cast %430 : vector<8x1xi1> to vector<8x1xi1>
    %439 = vector.broadcast %438 : vector<8x1xi1> to vector<8x128xi1>
    %440 = vector.shape_cast %437 : vector<1x128xf32> to vector<1x128xf32>
    %441 = vector.broadcast %440 : vector<1x128xf32> to vector<8x128xf32>
    %442 = arith.select %439, %441, %428 : vector<8x128xi1>, vector<8x128xf32>
    %c1_i32_124 = arith.constant 1 : i32
    %443 = arith.addi %arg0, %c1_i32_124 : i32
    %444 = vector.broadcast %443 : i32 to vector<8x128xi32>
    %445 = arith.cmpi eq, %4, %444 : vector<8x128xi32>
    %446 = vector.shape_cast %310 : vector<8x1xf32> to vector<8x1xf32>
    %447 = vector.broadcast %446 : vector<8x1xf32> to vector<8x128xf32>
    %448 = arith.select %445, %447, %442 : vector<8x128xi1>, vector<8x128xf32>
    %c0_125 = arith.constant 0 : index
    %c0_126 = arith.constant 0 : index
    %449 = vector.load %arg9[%c0_125, %c0_126] : memref<8x128xf32, #tpu.memory_space<vmem>>, vector<8x128xf32>
    tpu.vector_store %arg9[%c0_125, %c0_126], %436 {strides = array<i32>} : memref<8x128xf32, #tpu.memory_space<vmem>>, vector<8x128xf32>,
    %c0_127 = arith.constant 0 : index
    %c0_128 = arith.constant 0 : index
    %450 = vector.load %arg10[%c0_127, %c0_128] : memref<8x128xf32, #tpu.memory_space<vmem>>, vector<8x128xf32>
    tpu.vector_store %arg10[%c0_127, %c0_128], %448 {strides = array<i32>} : memref<8x128xf32, #tpu.memory_space<vmem>>, vector<8x128xf32>,
    %c0_129 = arith.constant 0 : index
    %c0_130 = arith.constant 0 : index
    %451 = vector.load %arg11[%c0_129, %c0_130] : memref<8x1xf32, #tpu.memory_space<vmem>>, vector<8x1xf32>
    tpu.vector_store %arg11[%c0_129, %c0_130], %310 {strides = array<i32>} : memref<8x1xf32, #tpu.memory_space<vmem>>, vector<8x1xf32>,
    return
  }
  func.func @transform_0(%arg0: i32) -> (i32, i32) {
    %c0_i32 = arith.constant 0 : i32
    %c0_i32_0 = arith.constant 0 : i32
    %c0_i32_1 = arith.constant 0 : i32
    return %c0_i32, %c0_i32_0 : i32, i32
  }
  func.func @transform_1(%arg0: i32) -> (i32, i32) {
    %c0_i32 = arith.constant 0 : i32
    %c0_i32_0 = arith.constant 0 : i32
    %c0_i32_1 = arith.constant 0 : i32
    return %c0_i32, %c0_i32_0 : i32, i32
  }
  func.func @transform_2(%arg0: i32) -> (i32, i32) {
    %c0_i32 = arith.constant 0 : i32
    %c0_i32_0 = arith.constant 0 : i32
    %c0_i32_1 = arith.constant 0 : i32
    return %c0_i32, %c0_i32_0 : i32, i32
  }
  func.func @transform_3(%arg0: i32) -> (i32, i32) {
    %c0_i32 = arith.constant 0 : i32
    %c0_i32_0 = arith.constant 0 : i32
    %c0_i32_1 = arith.constant 0 : i32
    return %c0_i32, %c0_i32_0 : i32, i32
  }
  func.func @transform_4(%arg0: i32) -> (i32, i32) {
    %c0_i32 = arith.constant 0 : i32
    %c0_i32_0 = arith.constant 0 : i32
    %c0_i32_1 = arith.constant 0 : i32
    return %c0_i32, %c0_i32_0 : i32, i32
  }
  func.func @transform_5(%arg0: i32) -> (i32, i32, i32) {
    %c0_i32 = arith.constant 0 : i32
    %c0_i32_0 = arith.constant 0 : i32
    %c0_i32_1 = arith.constant 0 : i32
    return %arg0, %c0_i32, %c0_i32_0 : i32, i32, i32
  }
  func.func @transform_6(%arg0: i32) -> (i32, i32, i32) {
    %c0_i32 = arith.constant 0 : i32
    %c0_i32_0 = arith.constant 0 : i32
    %c0_i32_1 = arith.constant 0 : i32
    return %arg0, %c0_i32, %c0_i32_0 : i32, i32, i32
  }
  func.func @transform_7(%arg0: i32) -> (i32, i32, i32) {
    %c0_i32 = arith.constant 0 : i32
    %c0_i32_0 = arith.constant 0 : i32
    %c0_i32_1 = arith.constant 0 : i32
    return %arg0, %c0_i32, %c0_i32_0 : i32, i32, i32
  }
}

</mosaic_0001>

<bundles_post_ra>
// kernel: beam_decode_all.1
= control target key start
LH: loop header
LB: loop body
LE: loop exit
PB: predicated region body
PF: predicated region fallthrough
CT: control target
= control target key end

     0   :  { %s1633_s0 = inlined_call_operand.vmem [shape: f32[128,128], index: 0, kind: input, shape index: {}]   ;;  %s1634_s1 = inlined_call_operand.vmem [shape: f32[128,128], index: 1, kind: input, shape index: {}]   ;;  %s1635_s2 = inlined_call_operand.vmem [shape: f32[1,128], index: 2, kind: input, shape index: {}]   ;;  %s1636_s3 = inlined_call_operand.vmem [shape: f32[8,128], index: 3, kind: input, shape index: {}]   ;;  %s1637_s4 = inlined_call_operand.vmem [shape: f32[8,1], index: 4, kind: input, shape index: {}]   ;;  %s1638_s5 = inlined_call_operand.hbm [shape: f32[8,8,128], index: 5, kind: output, shape index: {0}]   ;;  %s1639_s6 = inlined_call_operand.hbm [shape: s32[8,8,128], index: 6, kind: output, shape index: {1}]   ;;  %s1640_s7 = inlined_call_operand.hbm [shape: s32[8,8,128], index: 7, kind: output, shape index: {2}]  }
   0x1   :  { %1643 = sst [smem:[#allocation12_spill]] %s1633_s0 }
   0x2   :  { %13 = vsyncpa [#allocation6], 0 }
   0x3   :  { %15 = vsyncpa [#allocation6 + $0x1], 0 }
   0x4   :  { %16 = vsyncpa [#allocation8], 0 }
   0x5   :  { %18 = vsyncpa [#allocation8 + $0x1], 0  ;;  %s1154_s24 = smov 0   ;;  %s1156_s25 = smov 0  }
   0x6   :  { %s1158_s26 = smov 0   ;;  %s1160_s27 = smov 0  }
   0x7 LB: > { %s1175_s28 = sadd.s32 4294967295, %s1103_s27   ;;  %s1641_s29 = sadd.s32 4294967294, %s1103_s27   ;;  %s1103_s27 = sphi %s1160_s27, %s1656_s27   ;;  %s1099_s26 = sphi %s1158_s26, %s1655_s26   ;;  %s1095_s25 = sphi %s1156_s25, %s1654_s25   ;;  %s1091_s24 = sphi %s1154_s24, %s1653_s24  }
   0x8   : > { %s1179_s30 = sadd.s32 1, %s1103_s27   ;;  %s136_s8 = sadd.s32 1, %s1099_s26 }
   0x9   : > { %s133_s9 = ssub.s32 %s1103_s27, %s1179_s30  ;;  %p146_p0 = scmp.ne.s32.totalorder %s1099_s26, %s1095_s25 }
   0xa   : > { %p134_p1 = scmp.eq.s32.totalorder %s133_s9, 0  ;;  %p147_p2 = scmp.eq.s32.totalorder %s1175_s28, 7 }
   0xb   : > { %p152_p3 = scmp.ne.s32.totalorder %s1095_s25, %s1091_s24  ;;  %p153_p4 = scmp.eq.s32.totalorder %s1641_s29, 7 }
   0xc   : > { %s1192_s10 = scalar_select %p134_p1, %s1099_s26, %s136_s8  }
   0xd   : > { %p1194_p5 = por %p147_p2, %p146_p0  ;;  %p1198_p6 = por %p153_p4, %p152_p3 }
   0xe   : > { %p883_p7 = scmp.ge.s32.totalorder %s1103_s27, 1  ;;  %p238_p8 = scmp.lt.s32.totalorder %s1103_s27, 9 }
  0x10   : > { %p239_p9 = pnand %p883_p7, %p238_p8 }
  0x11   : > { %s258_s13 = sand.u32 (!%p239_p9), 1, %s1095_s25   ;;  %p887_p10 = scmp.ne.s32.totalorder (!%p239_p9), %s1175_s28, 0 }
  0x12   : > { %242 = sbr.rel (%p239_p9) target bundleno = 1760 (0x6e0), region = 40  ;;  %s1207_s14 = sshll.u32 (!%p239_p9), %s258_s13, 3 }
  0x13   : > { %s260_s15 = scalar_lea.vmem (!%p239_p9), [#allocation5], %s1207_s14 }
  0x17   : > { %v275_v0 = vlaneseq  ;;  %284 = sbr.rel (%p887_p10) target bundleno = 32 (0x20), region = 44 }
  0x19   : > { %v1209_v1 = vand.u32 127, %v275_v0  ;;  %v279_v2 = vshrl.u32 %v275_v0, 7 }
  0x1b   : > { %v277_v3 = vcvt.s32.f32 %v1209_v1  ;;  %v1212_v4 = vcvt.s32.f32 %v279_v2 }
  0x1c   : > { %v285_v5 = vld [vmem:[%s1636_s3] sm:$0xff]  ;;  %vm287_vm0 = vcmp.eq.s32.totalorder %v1209_v1, 0  ;;  %vm290_vm1 = vcmask 7168   ;;  %v1105_v6 = vmov 0.0   ;;  %v1106_v8 = vmov 1.0  }
  0x1d   : > { %286 = vst [vmem:[#allocation2] sm:$0xff] %v285_v5  ;;  %v288_v7 = vsel %vm287_vm0, 1.0, %v1105_v6 }
  0x1e   : > { %289 = vst [vmem:[#allocation3] sm:$0xff] %v288_v7 }
  0x1f   : > { %291 = vst.msk [vmem:[#allocation4] sm:$0xff] %vm290_vm1, %v1106_v8 }
  0x20 PF: > { %s1646_s0 = sld [smem:[#allocation12_spill]]  ;;  %v1107_v12 = vmov 0   ;;  %v355_v27 = vld [vmem:[%s1634_s1 + $0x78] sm:$0xff]  ;;  %v354_v28 = vld [vmem:[%s1634_s1 + $0x70] sm:$0xff]  ;;  %v353_v29 = vld [vmem:[%s1634_s1 + $0x68] sm:$0xff]  ;;  %v1108_v39 = vmov 1.0   ;;  %v405_v46 = vstv %s1175_s28 }
  0x21   : > { %968 = vset.pattern.permute.xlu0 %v1107_v12  ;;  %969 = vset.pattern.permute.xlu1 %v1107_v12  ;;  %v352_v30 = vld [vmem:[%s1634_s1 + $0x60] sm:$0xff]  ;;  %v351_v31 = vld [vmem:[%s1634_s1 + $0x58] sm:$0xff]  ;;  %v350_v32 = vld [vmem:[%s1634_s1 + $0x50] sm:$0xff]  ;;  %s891_s17 = sadd.s32 4294967294, %s1175_s28  ;;  %s890_s9 = sadd.s32 4294967295, %s1175_s28  ;;  %vm406_vm3 = vcmp.eq.s32.totalorder %v1209_v1, %v405_v46  ;;  %vm431_vm11 = vcmp.ge.s32.totalorder %v1209_v1, 2 }
  0x22   : > { %360 = vmatpush.msra.mxu1 %v355_v27  ;;  %v349_v33 = vld [vmem:[%s1634_s1 + $0x48] sm:$0xff]  ;;  %v348_v34 = vld [vmem:[%s1634_s1 + $0x40] sm:$0xff]  ;;  %v347_v35 = vld [vmem:[%s1634_s1 + $0x38] sm:$0xff]  ;;  %v417_v47 = vstv %s891_s17  ;;  %s1109_s18 = smov 1   ;;  %s1110_s19 = smov 2   ;;  %v1111_v2 = vmov 0.0  }
  0x23   : > { %v346_v36 = vld [vmem:[%s1634_s1 + $0x30] sm:$0xff]  ;;  %v345_v37 = vld [vmem:[%s1634_s1 + $0x28] sm:$0xff]  ;;  %v344_v40 = vld [vmem:[%s1634_s1 + $0x20] sm:$0xff]  ;;  %vm418_vm4 = vcmp.eq.s32.totalorder %v1209_v1, %v417_v47  ;;  %v411_v49 = vstv %s890_s9  ;;  %s1642_s29 = sadd.s32 1, %s1175_s28  ;;  %vm397_vm15 = vcmp.eq.s32.totalorder %v1209_v1, 2  ;;  %s1458_s17 = sshll.u32 %s1175_s28, 3 }
  0x24   : > { %361 = vmatpush.msra.mxu1 %v354_v28  ;;  %v343_v41 = vld [vmem:[%s1634_s1 + $0x18] sm:$0xff]  ;;  %v342_v42 = vld [vmem:[%s1634_s1 + $0x10] sm:$0xff]  ;;  %v341_v43 = vld [vmem:[%s1634_s1 + $0x8] sm:$0xff]  ;;  %vm412_vm5 = vcmp.eq.s32.totalorder %v1209_v1, %v411_v49  ;;  %vm433_vm13 = vcmp.le.s32.totalorder %v1209_v1, %v411_v49  ;;  %p399_p11 = scmp.lt.s32.totalorder %s1642_s29, 4  ;;  %s740_s20 = sshll.u32 %s260_s15, 4  ;;  %s741_s20 = int_to_ptr.vmem [resolvable:$true] %s740_s20 }
  0x25   : > { %v340_v44 = vld [vmem:[%s1634_s1] sm:$0xff]  ;;  %v1322_v45 = vld [vmem:[#allocation3] sm:$0xff]  ;;  %s718_s22 = scalar_lea.sflag [#allocation6], %s258_s13 }
  0x26   : > { %v294_v9 = vld [vmem:[#allocation4] sm:$0xff]  ;;  %v318_v10 = vld [vmem:[%s1646_s0 + $0x78] sm:$0xff]  ;;  %v316_v13 = vld [vmem:[%s1646_s0 + $0x68] sm:$0xff]  ;;  %362 = vmatpush.msra.mxu1 %v353_v29  ;;  %v407_v48 = vsel %vm406_vm3, %v1322_v45, -1.0  ;;  %v419_v50 = vsel %vm418_vm4, %v1322_v45, -1.0  ;;  %v413_v51 = vsel %vm412_vm5, %v1322_v45, -1.0 }
  0x27   : > { %v317_v11 = vld [vmem:[%s1646_s0 + $0x70] sm:$0xff]  ;;  %319 = vmatpush.msra.mxu0 %v318_v10  ;;  %297 = vperm.xlu0 %968, %v294_v9   ;;  %v315_v14 = vld [vmem:[%s1646_s0 + $0x60] sm:$0xff]  ;;  %v314_v15 = vld [vmem:[%s1646_s0 + $0x58] sm:$0xff]  ;;  %s400_s8 = scalar_select %p399_p11, 1, 0  ;;  %vm455_vm4 = vcmp.lt.f32.partialorder %v1212_v4, 4.0 }
  0x28   : > { %v313_v16 = vld [vmem:[%s1646_s0 + $0x50] sm:$0xff]  ;;  %v312_v17 = vld [vmem:[%s1646_s0 + $0x48] sm:$0xff]  ;;  %v311_v18 = vld [vmem:[%s1646_s0 + $0x40] sm:$0xff]  ;;  %363 = vmatpush.msra.mxu1 %v352_v30  ;;  %408 = vmax.xlane.f32.xlu1 %v407_v48 }
  0x29   : > { %320 = vmatpush.msra.mxu0 %v317_v11  ;;  %v310_v19 = vld [vmem:[%s1646_s0 + $0x38] sm:$0xff]  ;;  %v309_v20 = vld [vmem:[%s1646_s0 + $0x30] sm:$0xff]  ;;  %v308_v21 = vld [vmem:[%s1646_s0 + $0x28] sm:$0xff]  ;;  %420 = vmax.xlane.f32.xlu2 %v419_v50  ;;  %v401_v12 = vstv %s400_s8 }
  0x2a   : > { %v307_v22 = vld [vmem:[%s1646_s0 + $0x20] sm:$0xff]  ;;  %v306_v23 = vld [vmem:[%s1646_s0 + $0x18] sm:$0xff]  ;;  %v305_v24 = vld [vmem:[%s1646_s0 + $0x10] sm:$0xff]  ;;  %364 = vmatpush.msra.mxu1 %v351_v31  ;;  %vm402_vm0 = vcmp.eq.s32.totalorder %v401_v12, 1 }
  0x2b   : > { %321 = vmatpush.msra.mxu0 %v316_v13  ;;  %v304_v25 = vld [vmem:[%s1646_s0 + $0x8] sm:$0xff]  ;;  %v303_v26 = vld [vmem:[%s1646_s0] sm:$0xff]  ;;  %vm403_vm1 = vmand %vm397_vm15, %vm402_vm0  ;;  %s1001_s0 = scalar_lea.hbm %s1638_s5, 64 }
  0x2c   : > { %365 = vmatpush.msra.mxu1 %v350_v32  ;;  %v1331_v52 = vld [vmem:[#allocation2] sm:$0xff] }
  0x2d   : > { %322 = vmatpush.msra.mxu0 %v315_v14  ;;  %v390_v56 = vld [vmem:[%s1637_s4] sm:$0xff] }
  0x2e   : > { %366 = vmatpush.msra.mxu1 %v349_v33  ;;  %v970_v62 = vld [vmem:[%s1635_s2] ss:$0 sm:$0xff] }
  0x2f   : > { %323 = vmatpush.msra.mxu0 %v314_v15 }
  0x30   : > { %367 = vmatpush.msra.mxu1 %v348_v34  ;;  %414 = vmax.xlane.f32.xlu1 %v413_v51 }
  0x31   : > { %324 = vmatpush.msra.mxu0 %v313_v16 }
  0x32   : > { %368 = vmatpush.msra.mxu1 %v347_v35 }
  0x33   : > { %325 = vmatpush.msra.mxu0 %v312_v17 }
  0x34   : > { %369 = vmatpush.msra.mxu1 %v346_v36 }
  0x35   : > { %326 = vmatpush.msra.mxu0 %v311_v18 }
  0x36   : > { %370 = vmatpush.msra.mxu1 %v345_v37 }
  0x37   : > { %327 = vmatpush.msra.mxu0 %v310_v19 }
  0x38   : > { %371 = vmatpush.msra.mxu1 %v344_v40 }
  0x39   : > { %328 = vmatpush.msra.mxu0 %v309_v20  ;;  %v1112_v20 = vmov 4.0  }
  0x3a   : > { %372 = vmatpush.msra.mxu1 %v343_v41 }
  0x3b   : > { %329 = vmatpush.msra.mxu0 %v308_v21 }
  0x3c   : > { %373 = vmatpush.msra.mxu1 %v342_v42 }
  0x3d   : > { %330 = vmatpush.msra.mxu0 %v307_v22 }
  0x3e   : > { %374 = vmatpush.msra.mxu1 %v341_v43 }
  0x3f   : > { %331 = vmatpush.msra.mxu0 %v306_v23 }
  0x40   : > { %375 = vmatpush.msra.mxu1 %v340_v44 }
  0x41   : > { %332 = vmatpush.msra.mxu0 %v305_v24  ;;  %422 = vrot.lane.b32.xlu2 %v1322_v45, %s1109_s18 }
  0x43   : > { %333 = vmatpush.msra.mxu0 %v304_v25 }
  0x45   : > { %334 = vmatpush.msra.mxu0 %v303_v26 }
  0x49   : > { %424 = vrot.lane.b32.xlu1 %v1322_v45, %s1110_s19  ;;  %s738_s19 = scalar_lea.hbm %s1638_s5, %s1458_s17 }
  0x4a   : > { %s742_s21 = sshll.u32 %s738_s19, 4  ;;  %s743_s21 = int_to_ptr.hbm [resolvable:$true] %s742_s21 }
  0x4b   : > { %s995_s23 = sshra.s32 %s743_s21, 4  ;;  %s996_s23 = int_to_ptr.hbm [resolvable:$true] %s995_s23 }
  0x4c   : > { %s997_s8 = scalar_lea.hbm %s996_s23, 8  ;;  %p1002_p1 = scmp.lt.s32.totalorder %s996_s23, %s1638_s5 }
  0x4d   : > { %p998_p12 = scmp.ne.s32.totalorder %s996_s23, %s997_s8  ;;  %p1003_p2 = scmp.lt.s32.totalorder %s1001_s0, %s997_s8 }
  0x4f   : > { %p999_p13 = pnand %p998_p12, %p1194_p5  ;;  %p1004_p3 = por %p1003_p2, %p1002_p1 }
  0x51   : > { %393 = vperm.xlu1 %969, %v390_v56   ;;  %p1000_p0 = pneg %p999_p13 }
  0x53   : > { %p1005_p4 = pnand %p1004_p3, %p1000_p0 }
  0x99   : > { %v298_v38 = vpop.permute.xlu0 %297 }
  0x9a   : > { %vm300_vm2 = vcmp.eq.f32.partialorder %v277_v3, %v298_v38 }
  0x9b   : > { %889 = vmatmul.msk.f32.vlgmr.msra.gmra.mxu0 %vm300_vm2, %v1108_v39  ;;  %v409_v57 = vpop.xlane.xlu1 %408 }
  0x9c   : > { %v421_v58 = vpop.xlane.xlu2 %420  ;;  %vm426_vm6 = vcmp.eq.f32.partialorder %v1322_v45, %v409_v57 }
  0xa3   : > { %v415_v59 = vpop.xlane.xlu1 %414 }
  0xa4   : > { %v423_v60 = vpop.permute.xlu2 %422 }
  0xa5   : > { %vm427_vm7 = vcmp.eq.f32.partialorder %v423_v60, %v415_v59 }
  0xa6   : > { %vm428_vm8 = vmand %vm426_vm6, %vm427_vm7 }
  0xbb   : > { %v425_v61 = vpop.permute.xlu1 %424 }
  0xbc   : > { %vm429_vm9 = vcmp.eq.f32.partialorder %v425_v61, %v421_v58 }
  0xbd   : > { %vm430_vm10 = vmand %vm428_vm8, %vm429_vm9 }
  0xbe   : > { %vm432_vm12 = vmand %vm430_vm10, %vm431_vm11 }
  0xbf   : > { %vm434_vm14 = vmand %vm432_vm12, %vm433_vm13 }
  0xc0   : > { %v435_v5 = vsel %vm434_vm14, 1.0, %v1111_v2 }
  0xc1   : > { %436 = vmax.xlane.f32.xlu1 %v435_v5 }
  0xc3   : > { %v394_v11 = vpop.permute.xlu1 %393 }
 0x118   : > { %v336_v53 = vpop.f32.mrf.mxu0 }
 0x119   : > { %v337_v54 = vadd.f32 %v336_v53, %v1331_v52 }
 0x11b   : > { %971 = vtanh.f32 %v337_v54 }
 0x121   : > { %v972_v55 = vpop.eup %971 }
 0x122   : > { %376 = vmatmul.f32.vlgmr.msra.gmra.mxu1 %v972_v55 }
 0x134   : > { %v437_v16 = vpop.xlane.xlu1 %436 }
 0x135   : > { %vm438_vm2 = vcmp.gt.f32.partialorder %v437_v16, 0.0 }
 0x19f   : > { %v377_v63 = vpop.f32.mrf.mxu1 }
 0x1a0   : > { %v378_v0 = vadd.f32 %v970_v62, %v377_v63 }
 0x1a2   : > { %380 = vmax.xlane.f32.xlu0 %v378_v0 }
 0x215   : > { %v381_v6 = vpop.xlane.xlu0 %380 }
 0x216   : > { %v382_v7 = vsub.f32 %v378_v0, %v381_v6 }
 0x218   : > { %v383_v8 = vmul.f32 1.442695, %v382_v7 }
 0x21a   : > { %973 = vpow2.f32 %v383_v8 }
 0x220   : > { %v974_v9 = vpop.eup %973 }
 0x221   : > { %385 = vadd.xlane.f32.xlu2 %v974_v9 }
 0x294   : > { %v386_v10 = vpop.xlane.xlu2 %385 }
 0x295   : > { %975 = vlog2.f32 %v386_v10 }
 0x296   : > { %977 = vrcp.f32 %v1112_v20 }
 0x29b   : > { %v976_v13 = vpop.eup %975 }
 0x29c   : > { %v388_v14 = vmul.f32 0.6931472, %v976_v13  ;;  %v978_v21 = vpop.eup %977 }
 0x29d   : > { %v443_v22 = vmul.f32 4.0, %v978_v21  ;;  %vm447_vm3 = vweird.f32 %v978_v21 }
 0x29e   : > { %v389_v15 = vsub.f32 %v382_v7, %v388_v14 }
 0x29f   : > { %v444_v23 = vsub.f32 1.0, %v443_v22 }
 0x2a0   : > { %v396_v17 = vadd.f32 %v394_v11, %v389_v15 }
 0x2a1   : > { %v445_v24 = vmul.f32 %v978_v21, %v444_v23 }
 0x2a2   : > { %v404_v18 = vsel %vm403_vm1, -1e+20, %v396_v17 }
 0x2a3   : > { %v441_v19 = vsel %vm438_vm2, -1e+20, %v404_v18  ;;  %v446_v25 = vadd.f32 %v978_v21, %v445_v24 }
 0x2a4   : > { %456 = vmax.xlane.f32.xlu0 %v441_v19 }
 0x2a5   : > { %v448_v26 = vsel %vm447_vm3, %v978_v21, %v446_v25 }
 0x2a6   : > { %v449_v27 = vmul.f32 %v448_v26, %v1212_v4  ;;  %v1113_v26 = vmov 128.0  }
 0x2a7   : > { %979 = vrcp.f32 %v1113_v26 }
 0x2a8   : > { %v450_v28 = vfloor.f32 %v449_v27 }
 0x2aa   : > { %v1351_v30 = vmul.f32 4.0, %v450_v28 }
 0x2ac   : > { %v1359_v37 = vsub.f32 %v1212_v4, %v1351_v30 }
 0x2ad   : > { %v980_v27 = vpop.eup %979 }
 0x2ae   : > { %v453_v42 = vmul.f32 128.0, %v1359_v37  ;;  %vm504_vm7 = vcmp.eq.f32.partialorder %v1359_v37, 0.0  ;;  %vm551_vm8 = vcmp.eq.f32.partialorder %v1359_v37, 1.0  ;;  %v493_v28 = vmul.f32 128.0, %v980_v27 }
 0x2af   : > { %vm497_vm10 = vweird.f32 %v980_v27  ;;  %vm598_vm12 = vcmp.eq.f32.partialorder %v1359_v37, 2.0  ;;  %vm645_vm15 = vcmp.eq.f32.partialorder %v1359_v37, 3.0 }
 0x2b0   : > { %v1364_v48 = vadd.f32 %v453_v42, %v277_v3 }
 0x317   : > { %v457_v29 = vpop.xlane.xlu0 %456 }
 0x318   : > { %v458_v31 = vsel %vm455_vm4, %v457_v29, -inf  ;;  %v465_v32 = vsel %vm455_vm4, -inf, %v457_v29  ;;  %v494_v29 = vsub.f32 1.0, %v493_v28 }
 0x319   : > { %v459_v33 = vrot.slane %v458_v31, 4  ;;  %v466_v34 = vrot.slane %v465_v32, 4 }
 0x31b   : > { %v460_v35 = vmax.f32 %v458_v31, %v459_v33  ;;  %v467_v36 = vmax.f32 %v465_v32, %v466_v34  ;;  %v495_v31 = vmul.f32 %v980_v27, %v494_v29 }
 0x31d   : > { %v461_v38 = vrot.slane %v460_v35, 2  ;;  %v468_v39 = vrot.slane %v467_v36, 2  ;;  %v496_v32 = vadd.f32 %v980_v27, %v495_v31 }
 0x31f   : > { %v462_v40 = vmax.f32 %v460_v35, %v461_v38  ;;  %v469_v41 = vmax.f32 %v467_v36, %v468_v39  ;;  %v1398_v39 = vsel %vm497_vm10, %v980_v27, %v496_v32 }
 0x321   : > { %v463_v43 = vrot.slane %v462_v40, 1  ;;  %v470_v44 = vrot.slane %v469_v41, 1 }
 0x323   : > { %v464_v46 = vmax.f32 %v462_v40, %v463_v43  ;;  %v471_v47 = vmax.f32 %v469_v41, %v470_v44 }
 0x325   : > { %v472_v49 = vsel %vm455_vm4, %v464_v46, %v471_v47 }
 0x326   : > { %vm473_vm5 = vcmp.ge.f32.partialorder %v441_v19, %v472_v49  ;;  %v505_v22 = vsel %vm504_vm7, %v472_v49, 0.0 }
 0x327   : > { %v474_v50 = vsel %vm473_vm5, %v1364_v48, 1e+09 }
 0x328   : > { %475 = vmin.xlane.f32.xlu0 %v474_v50 }
 0x39b   : > { %v476_v51 = vpop.xlane.xlu0 %475 }
 0x39c   : > { %v477_v53 = vsel %vm455_vm4, %v476_v51, 1e+09  ;;  %v484_v54 = vsel %vm455_vm4, 1e+09, %v476_v51 }
 0x39d   : > { %v478_v55 = vrot.slane %v477_v53, 4  ;;  %v485_v56 = vrot.slane %v484_v54, 4 }
 0x39f   : > { %v479_v57 = vmin.f32 %v477_v53, %v478_v55  ;;  %v486_v58 = vmin.f32 %v484_v54, %v485_v56 }
 0x3a1   : > { %v480_v3 = vrot.slane %v479_v57, 2  ;;  %v487_v59 = vrot.slane %v486_v58, 2 }
 0x3a3   : > { %v481_v60 = vmin.f32 %v479_v57, %v480_v3  ;;  %v488_v61 = vmin.f32 %v486_v58, %v487_v59 }
 0x3a5   : > { %v482_v62 = vrot.slane %v481_v60, 1  ;;  %v489_v63 = vrot.slane %v488_v61, 1 }
 0x3a7   : > { %v483_v0 = vmin.f32 %v481_v60, %v482_v62  ;;  %v490_v2 = vmin.f32 %v488_v61, %v489_v63 }
 0x3a9   : > { %v1375_v5 = vsel %vm455_vm4, %v483_v0, %v490_v2 }
 0x3aa   : > { %vm508_vm6 = vcmp.eq.f32.partialorder %v1364_v48, %v1375_v5  ;;  %v499_v42 = vmul.f32 %v1398_v39, %v1375_v5 }
 0x3ab   : > { %v509_v6 = vsel %vm508_vm6, -inf, %v441_v19 }
 0x3ac   : > { %510 = vmax.xlane.f32.xlu0 %v509_v6  ;;  %v500_v49 = vfloor.f32 %v499_v42 }
 0x3ae   : > { %v501_v55 = vmul.f32 128.0, %v500_v49  ;;  %v503_v58 = vadd.f32 %v500_v49, %v1351_v30 }
 0x3b0   : > { %v502_v60 = vsub.f32 %v1375_v5, %v501_v55  ;;  %v507_v63 = vsel %vm504_vm7, %v503_v58, 0.0 }
 0x41f   : > { %v511_v7 = vpop.xlane.xlu0 %510 }
 0x420   : > { %v512_v8 = vsel %vm455_vm4, %v511_v7, -inf  ;;  %v519_v9 = vsel %vm455_vm4, -inf, %v511_v7  ;;  %v506_v7 = vsel %vm504_vm7, %v502_v60, 0.0 }
 0x421   : > { %v513_v10 = vrot.slane %v512_v8, 4  ;;  %v520_v11 = vrot.slane %v519_v9, 4 }
 0x423   : > { %v514_v12 = vmax.f32 %v512_v8, %v513_v10  ;;  %v521_v13 = vmax.f32 %v519_v9, %v520_v11 }
 0x425   : > { %v515_v14 = vrot.slane %v514_v12, 2  ;;  %v522_v15 = vrot.slane %v521_v13, 2 }
 0x427   : > { %v516_v16 = vmax.f32 %v514_v12, %v515_v14  ;;  %v523_v17 = vmax.f32 %v521_v13, %v522_v15 }
 0x429   : > { %v517_v18 = vrot.slane %v516_v16, 1  ;;  %v524_v20 = vrot.slane %v523_v17, 1 }
 0x42b   : > { %v518_v19 = vmax.f32 %v516_v16, %v517_v18  ;;  %v525_v21 = vmax.f32 %v523_v17, %v524_v20 }
 0x42d   : > { %v526_v23 = vsel %vm455_vm4, %v518_v19, %v525_v21 }
 0x42e   : > { %vm527_vm9 = vcmp.ge.f32.partialorder %v509_v6, %v526_v23  ;;  %v1391_v24 = vsel %vm551_vm8, %v526_v23, %v505_v22 }
 0x42f   : > { %v528_v25 = vsel %vm527_vm9, %v1364_v48, 1e+09 }
 0x430   : > { %529 = vmin.xlane.f32.xlu2 %v528_v25 }
 0x4a3   : > { %v530_v33 = vpop.xlane.xlu2 %529 }
 0x4a4   : > { %v531_v34 = vsel %vm455_vm4, %v530_v33, 1e+09  ;;  %v538_v35 = vsel %vm455_vm4, 1e+09, %v530_v33 }
 0x4a5   : > { %v532_v36 = vrot.slane %v531_v34, 4  ;;  %v539_v38 = vrot.slane %v538_v35, 4 }
 0x4a7   : > { %v533_v40 = vmin.f32 %v531_v34, %v532_v36  ;;  %v540_v41 = vmin.f32 %v538_v35, %v539_v38 }
 0x4a9   : > { %v534_v43 = vrot.slane %v533_v40, 2  ;;  %v541_v44 = vrot.slane %v540_v41, 2 }
 0x4ab   : > { %v535_v46 = vmin.f32 %v533_v40, %v534_v43  ;;  %v542_v47 = vmin.f32 %v540_v41, %v541_v44 }
 0x4ad   : > { %v536_v50 = vrot.slane %v535_v46, 1  ;;  %v543_v51 = vrot.slane %v542_v47, 1 }
 0x4af   : > { %v537_v53 = vmin.f32 %v535_v46, %v536_v50  ;;  %v544_v54 = vmin.f32 %v542_v47, %v543_v51 }
 0x4b1   : > { %v545_v56 = vsel %vm455_vm4, %v537_v53, %v544_v54 }
 0x4b2   : > { %vm555_vm11 = vcmp.eq.f32.partialorder %v1364_v48, %v545_v56  ;;  %v546_v57 = vmul.f32 %v545_v56, %v1398_v39 }
 0x4b3   : > { %v556_v3 = vsel %vm555_vm11, -inf, %v509_v6 }
 0x4b4   : > { %557 = vmax.xlane.f32.xlu0 %v556_v3  ;;  %v547_v59 = vfloor.f32 %v546_v57 }
 0x4b6   : > { %v548_v61 = vmul.f32 128.0, %v547_v59  ;;  %v550_v62 = vadd.f32 %v547_v59, %v1351_v30 }
 0x4b8   : > { %v549_v0 = vsub.f32 %v545_v56, %v548_v61  ;;  %v554_v2 = vsel %vm551_vm8, %v550_v62, %v507_v63 }
 0x4ba   : > { %v553_v6 = vsel %vm551_vm8, %v549_v0, %v506_v7 }
 0x527   : > { %v558_v8 = vpop.xlane.xlu0 %557 }
 0x528   : > { %v559_v5 = vsel %vm455_vm4, %v558_v8, -inf  ;;  %v566_v9 = vsel %vm455_vm4, -inf, %v558_v8 }
 0x529   : > { %v560_v10 = vrot.slane %v559_v5, 4  ;;  %v567_v11 = vrot.slane %v566_v9, 4 }
 0x52b   : > { %v561_v12 = vmax.f32 %v559_v5, %v560_v10  ;;  %v568_v13 = vmax.f32 %v566_v9, %v567_v11 }
 0x52d   : > { %v562_v14 = vrot.slane %v561_v12, 2  ;;  %v569_v15 = vrot.slane %v568_v13, 2 }
 0x52f   : > { %v563_v16 = vmax.f32 %v561_v12, %v562_v14  ;;  %v570_v17 = vmax.f32 %v568_v13, %v569_v15 }
 0x531   : > { %v564_v18 = vrot.slane %v563_v16, 1  ;;  %v571_v20 = vrot.slane %v570_v17, 1 }
 0x533   : > { %v565_v19 = vmax.f32 %v563_v16, %v564_v18  ;;  %v572_v21 = vmax.f32 %v570_v17, %v571_v20 }
 0x535   : > { %v573_v22 = vsel %vm455_vm4, %v565_v19, %v572_v21 }
 0x536   : > { %vm574_vm13 = vcmp.ge.f32.partialorder %v556_v3, %v573_v22  ;;  %v599_v23 = vsel %vm598_vm12, %v573_v22, %v1391_v24 }
 0x537   : > { %v575_v25 = vsel %vm574_vm13, %v1364_v48, 1e+09 }
 0x538   : > { %576 = vmin.xlane.f32.xlu2 %v575_v25 }
 0x5ab   : > { %v577_v26 = vpop.xlane.xlu2 %576 }
 0x5ac   : > { %v578_v27 = vsel %vm455_vm4, %v577_v26, 1e+09  ;;  %v585_v28 = vsel %vm455_vm4, 1e+09, %v577_v26 }
 0x5ad   : > { %v579_v29 = vrot.slane %v578_v27, 4  ;;  %v586_v31 = vrot.slane %v585_v28, 4 }
 0x5af   : > { %v580_v32 = vmin.f32 %v578_v27, %v579_v29  ;;  %v587_v33 = vmin.f32 %v585_v28, %v586_v31 }
 0x5b1   : > { %v581_v34 = vrot.slane %v580_v32, 2  ;;  %v588_v35 = vrot.slane %v587_v33, 2 }
 0x5b3   : > { %v582_v36 = vmin.f32 %v580_v32, %v581_v34  ;;  %v589_v38 = vmin.f32 %v587_v33, %v588_v35 }
 0x5b5   : > { %v583_v40 = vrot.slane %v582_v36, 1  ;;  %v590_v24 = vrot.slane %v589_v38, 1 }
 0x5b7   : > { %v584_v41 = vmin.f32 %v582_v36, %v583_v40  ;;  %v591_v42 = vmin.f32 %v589_v38, %v590_v24 }
 0x5b9   : > { %v592_v43 = vsel %vm455_vm4, %v584_v41, %v591_v42 }
 0x5ba   : > { %vm602_vm14 = vcmp.eq.f32.partialorder %v1364_v48, %v592_v43  ;;  %v593_v44 = vmul.f32 %v592_v43, %v1398_v39 }
 0x5bb   : > { %v603_v46 = vsel %vm602_vm14, -inf, %v556_v3 }
 0x5bc   : > { %604 = vmax.xlane.f32.xlu0 %v603_v46  ;;  %v594_v47 = vfloor.f32 %v593_v44 }
 0x5be   : > { %v595_v49 = vmul.f32 128.0, %v594_v47  ;;  %v597_v50 = vadd.f32 %v594_v47, %v1351_v30 }
 0x5c0   : > { %v596_v51 = vsub.f32 %v592_v43, %v595_v49  ;;  %v1439_v53 = vsel %vm598_vm12, %v597_v50, %v554_v2 }
 0x5c2   : > { %v1443_v54 = vsel %vm598_vm12, %v596_v51, %v553_v6 }
 0x62f   : > { %v605_v55 = vpop.xlane.xlu0 %604 }
 0x630   : > { %v606_v56 = vsel %vm455_vm4, %v605_v55, -inf  ;;  %v613_v57 = vsel %vm455_vm4, -inf, %v605_v55 }
 0x631   : > { %v607_v58 = vrot.slane %v606_v56, 4  ;;  %v614_v3 = vrot.slane %v613_v57, 4 }
 0x633   : > { %v608_v59 = vmax.f32 %v606_v56, %v607_v58  ;;  %v615_v60 = vmax.f32 %v613_v57, %v614_v3 }
 0x635   : > { %v609_v61 = vrot.slane %v608_v59, 2  ;;  %v616_v62 = vrot.slane %v615_v60, 2 }
 0x637   : > { %v610_v63 = vmax.f32 %v608_v59, %v609_v61  ;;  %v617_v0 = vmax.f32 %v615_v60, %v616_v62 }
 0x639   : > { %v611_v2 = vrot.slane %v610_v63, 1  ;;  %v618_v7 = vrot.slane %v617_v0, 1 }
 0x63b   : > { %v612_v6 = vmax.f32 %v610_v63, %v611_v2  ;;  %v619_v8 = vmax.f32 %v617_v0, %v618_v7 }
 0x63d   : > { %v620_v5 = vsel %vm455_vm4, %v612_v6, %v619_v8 }
 0x63e   : > { %vm621_vm0 = vcmp.ge.f32.partialorder %v603_v46, %v620_v5  ;;  %v646_v9 = vsel %vm645_vm15, %v620_v5, %v599_v23 }
 0x63f   : > { %v622_v10 = vsel %vm621_vm0, %v1364_v48, 1e+09  ;;  %649 = vst [vmem:[%s260_s15] sm:$0xff] %v646_v9 }
 0x640   : > { %623 = vmin.xlane.f32.xlu2 %v622_v10 }
 0x641   : > { %1008 = shalt.err (!%p1005_p4)
}
 0x642   : > { %910 = dma.vmem_to_hbm [thread:$0]  (%p1194_p5), %s741_s20, 128, %s743_s21, %s718_s22   ;;  %v657_v29 = vperm.slane %v1331_v52, 0  ;;  %v659_v32 = vperm.slane %v1322_v45, 0  ;;  %v664_v33 = vperm.slane %v1331_v52, 1  ;;  %v666_v34 = vperm.slane %v1322_v45, 1 }
 0x643   : > { %s1647_s0 = sadd.s32 1, %s1175_s28  ;;  %v671_v35 = vperm.slane %v1331_v52, 2  ;;  %v673_v4 = vperm.slane %v1322_v45, 2  ;;  %v678_v36 = vperm.slane %v1331_v52, 3  ;;  %v685_v24 = vperm.slane %v1331_v52, 4  ;;  %s752_s16 = scalar_lea.hbm %s1639_s6, %s1458_s17 }
 0x644   : > { %v1487_v28 = vstv %s1647_s0  ;;  %v687_v41 = vperm.slane %v1322_v45, 4  ;;  %v692_v42 = vperm.slane %v1331_v52, 5  ;;  %v694_v43 = vperm.slane %v1322_v45, 5  ;;  %s722_s29 = sand.u32 1, %s1175_s28   ;;  %s1648_s19 = scalar_lea.vmem [#allocation7], %s1207_s14 }
 0x645   : > { %v699_v44 = vperm.slane %v1331_v52, 6  ;;  %vm715_vm1 = vcmask 7168   ;;  %v706_v49 = vperm.slane %v1331_v52, 7  ;;  %v708_v50 = vperm.slane %v1322_v45, 7  ;;  %s1526_s20 = sshll.u32 %s1648_s19, 4  ;;  %s1528_s21 = sshll.u32 %s752_s16, 4  ;;  %s755_s20 = int_to_ptr.vmem [resolvable:$true] %s1526_s20  ;;  %s757_s21 = int_to_ptr.hbm [resolvable:$true] %s1528_s21 }
 0x646   : > { %s766_s8 = scalar_lea.hbm %s1640_s7, %s1458_s17  ;;  %vm711_vm11 = vcmp.eq.s32.totalorder %v1209_v1, %v1487_v28  ;;  %s1649_s17 = smov %s1648_s19 }
 0x647   : > { %s1650_s9 = scalar_lea.vmem [#allocation9], %s1207_s14  ;;  %s1565_s0 = sshll.u32 %s766_s8, 4  ;;  %s771_s0 = int_to_ptr.hbm [resolvable:$true] %s1565_s0 }
 0x648   : > { %s1563_s18 = sshll.u32 %s1650_s9, 4  ;;  %s1573_s13 = scalar_lea.sflag [#allocation8], %s722_s29  ;;  %s769_s18 = int_to_ptr.vmem [resolvable:$true] %s1563_s18 }
 0x649   : > { %s1023_s15 = sshra.s32 %s757_s21, 4  ;;  %s1029_s23 = scalar_lea.hbm %s1639_s6, 64  ;;  %s1024_s15 = int_to_ptr.hbm [resolvable:$true] %s1023_s15 }
 0x64a   : > { %s1025_s16 = scalar_lea.hbm %s1024_s15, 8  ;;  %p1030_p10 = scmp.lt.s32.totalorder %s1024_s15, %s1639_s6 }
 0x64b   : > { %p1026_p7 = scmp.ne.s32.totalorder %s1024_s15, %s1025_s16  ;;  %p1031_p11 = scmp.lt.s32.totalorder %s1029_s23, %s1025_s16 }
 0x64d   : > { %p1027_p8 = pnand %p1026_p7, %p1194_p5  ;;  %p1032_p12 = por %p1031_p11, %p1030_p10 }
 0x64f   : > { %p1028_p9 = pneg %p1027_p8 }
 0x651   : > { %p1033_p13 = pnand %p1032_p12, %p1028_p9 }
 0x6b3   : > { %v624_v48 = vpop.xlane.xlu2 %623 }
 0x6b4   : > { %v625_v11 = vsel %vm455_vm4, %v624_v48, 1e+09  ;;  %v632_v12 = vsel %vm455_vm4, 1e+09, %v624_v48 }
 0x6b5   : > { %v626_v13 = vrot.slane %v625_v11, 4  ;;  %v633_v14 = vrot.slane %v632_v12, 4 }
 0x6b7   : > { %v627_v15 = vmin.f32 %v625_v11, %v626_v13  ;;  %v634_v16 = vmin.f32 %v632_v12, %v633_v14 }
 0x6b9   : > { %v628_v17 = vrot.slane %v627_v15, 2  ;;  %v635_v18 = vrot.slane %v634_v16, 2 }
 0x6bb   : > { %v629_v20 = vmin.f32 %v627_v15, %v628_v17  ;;  %v636_v19 = vmin.f32 %v634_v16, %v635_v18 }
 0x6bd   : > { %v630_v21 = vrot.slane %v629_v20, 1  ;;  %v637_v22 = vrot.slane %v636_v19, 1 }
 0x6bf   : > { %v631_v23 = vmin.f32 %v629_v20, %v630_v21  ;;  %v638_v25 = vmin.f32 %v636_v19, %v637_v22 }
 0x6c1   : > { %v639_v26 = vsel %vm455_vm4, %v631_v23, %v638_v25 }
 0x6c2   : > { %v640_v27 = vmul.f32 %v639_v26, %v1398_v39  ;;  %v680_v39 = vperm.slane %v1322_v45, 3 }
 0x6c4   : > { %v641_v31 = vfloor.f32 %v640_v27 }
 0x6c6   : > { %v642_v38 = vmul.f32 128.0, %v641_v31  ;;  %v644_v40 = vadd.f32 %v641_v31, %v1351_v30  ;;  %v701_v30 = vperm.slane %v1322_v45, 6 }
 0x6c8   : > { %v643_v46 = vsub.f32 %v639_v26, %v642_v38  ;;  %v1506_v47 = vsel %vm645_vm15, %v644_v40, %v1439_v53 }
 0x6c9   : > { %vm654_vm2 = vcmp.eq.f32.partialorder %v1506_v47, 0.0  ;;  %vm661_vm3 = vcmp.eq.f32.partialorder %v1506_v47, 1.0  ;;  %vm668_vm4 = vcmp.eq.f32.partialorder %v1506_v47, 2.0  ;;  %vm675_vm5 = vcmp.eq.f32.partialorder %v1506_v47, 3.0 }
 0x6ca   : > { %v647_v51 = vsel %vm645_vm15, %v643_v46, %v1443_v54  ;;  %v658_v53 = vsel %vm654_vm2, %v657_v29, 0.0  ;;  %v660_v55 = vsel %vm654_vm2, %v659_v32, 0.0  ;;  %vm682_vm7 = vcmp.eq.f32.partialorder %v1506_v47, 4.0 }
 0x6cb   : > { %vm900_vm6 = vcmp.lt.s32.totalorder %v647_v51, 0  ;;  %v901_v52 = vceil.f32 %v647_v51  ;;  %v902_v56 = vfloor.f32 %v647_v51  ;;  %v665_v57 = vsel %vm661_vm3, %v664_v33, %v658_v53  ;;  %716 = vst.msk [vmem:[#allocation4] sm:$0xff] %vm715_vm1, %v647_v51 }
 0x6cc   : > { %v667_v45 = vsel %vm661_vm3, %v666_v34, %v660_v55  ;;  %v672_v37 = vsel %vm668_vm4, %v671_v35, %v665_v57  ;;  %vm689_vm8 = vcmp.eq.f32.partialorder %v1506_v47, 5.0  ;;  %vm696_vm9 = vcmp.eq.f32.partialorder %v1506_v47, 6.0 }
 0x6cd   : > { %v903_v54 = vsel %vm900_vm6, %v901_v52, %v902_v56  ;;  %v674_v58 = vsel %vm668_vm4, %v673_v4, %v667_v45  ;;  %v679_v3 = vsel %vm675_vm5, %v678_v36, %v672_v37  ;;  %vm905_vm10 = vcmp.lt.s32.totalorder %v1506_v47, 0 }
 0x6ce   : > { %v904_v59 = vcvt.f32.s32 %v903_v54  ;;  %v681_v60 = vsel %vm675_vm5, %v680_v39, %v674_v58  ;;  %v686_v61 = vsel %vm682_vm7, %v685_v24, %v679_v3  ;;  %v906_v0 = vceil.f32 %v1506_v47 }
 0x6cf   : > { %v688_v62 = vsel %vm682_vm7, %v687_v41, %v681_v60  ;;  %v693_v63 = vsel %vm689_vm8, %v692_v42, %v686_v61  ;;  %v907_v2 = vfloor.f32 %v1506_v47  ;;  %vm703_vm12 = vcmp.eq.f32.partialorder %v1506_v47, 7.0 }
 0x6d0   : > { %651 = vst [vmem:[%s1649_s17] sm:$0xff] %v904_v59  ;;  %v695_v7 = vsel %vm689_vm8, %v694_v43, %v688_v62  ;;  %v700_v6 = vsel %vm696_vm9, %v699_v44, %v693_v63 }
 0x6d1   : > { %v702_v8 = vsel %vm696_vm9, %v701_v30, %v695_v7  ;;  %v707_v5 = vsel %vm703_vm12, %v706_v49, %v700_v6 }
 0x6d2   : > { %1036 = shalt.err (!%p1033_p13)
}
 0x6d3   : > { %911 = dma.vmem_to_hbm [thread:$0]  (%p1194_p5), %s755_s20, 128, %s757_s21, %s1573_s13   ;;  %v908_v9 = vsel %vm905_vm10, %v906_v0, %v907_v2  ;;  %v709_v10 = vsel %vm703_vm12, %v708_v50, %v702_v8  ;;  %713 = vst [vmem:[#allocation2] sm:$0xff] %v707_v5 }
 0x6d4   : > { %v909_v48 = vcvt.f32.s32 %v908_v9  ;;  %v712_v11 = vsel %vm711_vm11, %v647_v51, %v709_v10  ;;  %s1651_s28 = smov %s1650_s9  ;;  %s1051_s29 = sshra.s32 %s771_s0, 4  ;;  %s1052_s29 = int_to_ptr.hbm [resolvable:$true] %s1051_s29 }
 0x6d5   : > { %714 = vst [vmem:[#allocation3] sm:$0xff] %v712_v11  ;;  %s1053_s20 = scalar_lea.hbm %s1052_s29, 8  ;;  %s1057_s15 = scalar_lea.hbm %s1640_s7, 64 }
 0x6d6   : > { %653 = vst [vmem:[%s1651_s28] sm:$0xff] %v909_v48  ;;  %p1054_p0 = scmp.ne.s32.totalorder %s1052_s29, %s1053_s20  ;;  %p1058_p3 = scmp.lt.s32.totalorder %s1052_s29, %s1640_s7 }
 0x6d7   : > { %p1059_p4 = scmp.lt.s32.totalorder %s1057_s15, %s1053_s20 }
 0x6d8   : > { %p1055_p1 = pnand %p1054_p0, %p1194_p5 }
 0x6d9   : > { %p1060_p7 = por %p1059_p4, %p1058_p3 }
 0x6da   : > { %p1056_p2 = pneg %p1055_p1 }
 0x6dc   : > { %p1061_p8 = pnand %p1060_p7, %p1056_p2 }
 0x6de   : > { %1064 = shalt.err (!%p1061_p8)
}
 0x6df   : > { %912 = dma.vmem_to_hbm [thread:$0]  (%p1194_p5), %s769_s18, 128, %s771_s0, %s1573_s13  }
 0x6e0 PF: > { %p926_p9 = scmp.ge.s32.totalorder %s1103_s27, 2  ;;  %s782_s14 = sand.u32 1, %s1091_s24  }
 0x6e1   : > { %s783_s22 = scalar_lea.sflag [#allocation6], %s782_s14 }
 0x6e2   : > { %p917_p10 = pnand %p926_p9, %p1198_p6 }
 0x6e4   : > { %p918_p11 = pneg %p917_p10 }
 0x6e6   : > { %1082 = dma.done.wait (%p918_p11), %s783_s22, 128  }
 0x6e7   : > { %1084 = vsyncadd (%p918_p11), %s783_s22, 4294967168  ;;  %s1652_s23 = sadd.s32 4294967294, %s1103_s27  }
 0x6e8   : > { %s792_s8 = sand.u32 1, %s1652_s23  }
 0x6e9   : > { %s793_s17 = scalar_lea.sflag [#allocation8], %s792_s8 }
 0x6ea   : > { %1086 = dma.done.wait (%p918_p11), %s793_s17, 256  }
 0x6eb   : > { %1088 = vsyncadd (%p918_p11), %s793_s17, 4294967040  ;;  %p21_p5 = scmp.ge.s32.totalorder %s1179_s30, 10   ;;  %s1653_s24 = smov %s1095_s25 }
 0x6ec   : > { %s1654_s25 = smov %s1099_s26  ;;  %s1655_s26 = smov %s1192_s10 }
 0x6ed   : > { %s1656_s27 = smov %s1179_s30  ;;  %23 = sbr.rel (!%p21_p5) target bundleno = 7 (0x7), region = 108 }
 0x6f2   :  { %809 = vsyncpa [#allocation6], 1 }
 0x6f3   :  { %811 = vsyncpa [#allocation6 + $0x1], 1 }
 0x6f4   :  { %812 = vsyncpa [#allocation8], 1 }
 0x6f5   :  { %814 = vsyncpa [#allocation8 + $0x1], 1 }

</bundles_post_ra>
